<compile_context>
chip_gen: v6e
topology: v6e:2x2x1
jax: 0.10.0
libtpu: 0.0.40
codegen_flags: <defaults>
</compile_context>

<pallas_src>
import functools

import numpy as np
import jax
import jax.numpy as jnp
from jax import lax
from jax.experimental import pallas as pl
from jax.experimental.pallas import tpu as pltpu


# ---------------------------------------------------------------------------
# Fused Pallas kernel
# ---------------------------------------------------------------------------

def _generator_kernel(
    lhs1_ref, so_ref, act_ref, z_ref,
    g1_ref, b1v_ref,
    w2r_ref, b2v_ref,
    w3g_ref, b3v_ref,
    wl_ref, bl_ref,
    w1_ref, b1_ref,
    w2a_ref, w2b_ref, b2_ref,
    w3_ref, b3_ref,
    w4a_ref, w4b_ref, b4_ref,
    wg1a_ref, wg1b_ref, bg1_ref,
    wg2_ref, bg2_ref,
    wg3_ref, bg3_ref,
    o_ref,
    lhs2_ref, y2_ref):
  """Fully fused Generator.forward (all f32, BP = batch padded to 8).

  Activation layouts:
    lhs1_ref : (24*BP, 150)  conv1 im2col rows, row = h*BP + b,
               lane = kh*50 + c  with  lhs1[(h,b), kh*50+c] = xpad[b, 2h+kh, c]
    y1       : (24*BP, 128)  conv1 output, row = h*BP + b, lane = co*24 + w
               (lanes 72..127 are zero by construction of g1 / b1v)
    lhs2_ref : (8*BP, 512)   conv2 grouped LHS, row = i*BP + b,
               lane = kh*128 + (ci*24 + w) = conv1[b, ci, 3i+kh-1, w]
               (slot (i=0, kh=0) is conv2's top padding row -> zeroed)
    y2_ref   : (BP, 256)     conv2 output, lane = i*32 + (co2*8 + j)
    y3       : (BP, 49)      conv3 output, lane = p*7 + q (matches .view(-1,49))
  """
  relu = lambda v: jnp.maximum(v, 0.0)
  elu = lambda v: jnp.where(v > 0, v, jnp.exp(jnp.minimum(v, 0.0)) - 1.0)
  lrelu = lambda v: jnp.where(v > 0, v, 0.02 * v)
  dot = functools.partial(jnp.dot, preferred_element_type=jnp.float32)

  BP = so_ref.shape[0]

  # ---- conv1: Conv2d(1,3,k=3,s=2,p=1) 48x48 -> 24x24, one MXU matmul -------
  y1 = relu(dot(lhs1_ref[...], g1_ref[...]) + b1v_ref[...])       # (24*BP, 128)

  # ---- regroup conv1 rows by conv2 output row (aligned full-tile stores) ---
  lhs2_ref[0:BP, 0:128] = jnp.zeros((BP, 128), jnp.float32)       # pad row -1
  for i in range(8):
    for kh in range(4):
      h = 3 * i + kh - 1
      if 0 <= h < 24:
        lhs2_ref[i * BP:(i + 1) * BP, kh * 128:(kh + 1) * 128] = (
            y1[h * BP:(h + 1) * BP, :])

  # ---- conv2: Conv2d(3,3,k=4,s=3,p=1) 24x24 -> 8x8, one MXU matmul ---------
  y2rows = relu(dot(lhs2_ref[...], w2r_ref[...]) + b2v_ref[...])  # (8*BP, 32)
  for i in range(8):
    y2_ref[:, i * 32:(i + 1) * 32] = y2rows[i * BP:(i + 1) * BP, :]

  # ---- conv3: Conv2d(3,1,k=2,s=1,p=0) 8x8 -> 7x7, then fc_link -------------
  y3 = relu(dot(y2_ref[...], w3g_ref[...]) + b3v_ref[...])        # (BP, 49)
  topo = dot(y3, wl_ref[...]) + bl_ref[...]                       # (BP, 24)

  # ---- FC tail (torch.cat realised as split matmuls) -----------------------
  s_o_f = elu(dot(so_ref[...], w1_ref[...]) + b1_ref[...])                      # (BP, H)
  s_f = elu(dot(s_o_f, w2a_ref[...]) + dot(topo, w2b_ref[...]) + b2_ref[...])   # (BP, 32)
  a_f = elu(act_ref[...] * w3_ref[...] + b3_ref[...])                           # (BP, H)
  features = elu(dot(s_f, w4a_ref[...]) + dot(a_f, w4b_ref[...]) + b4_ref[...]) # (BP, 32)
  h1 = lrelu(dot(features, wg1a_ref[...]) + z_ref[...] * wg1b_ref[...]
             + bg1_ref[...])                                                    # (BP, 128)
  h2 = lrelu(dot(h1, wg2_ref[...]) + bg2_ref[...])                              # (BP, 64)
  o_ref[...] = dot(h2, wg3_ref[...]) + bg3_ref[...]                             # (BP, 128)


# ---------------------------------------------------------------------------
# Parameter init (PyTorch layout)
# ---------------------------------------------------------------------------

def init_params(key, state_input_shape, hidden_shape):
  def linear(k, fan_in, fan_out):
    k1, k2 = jax.random.split(k)
    s = 1.0 / jnp.sqrt(jnp.float32(fan_in))
    w = jax.random.uniform(k1, (fan_out, fan_in), jnp.float32, -s, s)
    b = jax.random.uniform(k2, (fan_out,), jnp.float32, -s, s)
    return w, b

  def conv(k, cout, cin, ksz):
    k1, k2 = jax.random.split(k)
    fan_in = cin * ksz * ksz
    s = 1.0 / jnp.sqrt(jnp.float32(fan_in))
    w = jax.random.uniform(k1, (cout, cin, ksz, ksz), jnp.float32, -s, s)
    b = jax.random.uniform(k2, (cout,), jnp.float32, -s, s)
    return w, b

  keys = jax.random.split(key, 11)
  p = {}
  p['conv1'] = conv(keys[0], 3, 1, 3)
  p['conv2'] = conv(keys[1], 3, 3, 4)
  p['conv3'] = conv(keys[2], 1, 3, 2)
  p['fc_link'] = linear(keys[3], 49, 24)
  p['fc1'] = linear(keys[4], state_input_shape, hidden_shape)
  p['fc2'] = linear(keys[5], hidden_shape + 24, 32)
  p['fc3'] = linear(keys[6], 1, hidden_shape)
  p['fc4'] = linear(keys[7], hidden_shape + 32, 32)
  p['gm1'] = linear(keys[8], 32 + 1, 128)
  p['gm2'] = linear(keys[9], 128, 64)
  p['gm3'] = linear(keys[10], 64, 1)
  return p


def prepare_params(p):
  """One-time (numpy) conversion of PyTorch-layout params into kernel-ready
  matmul operands; the per-call wrapper never reshapes weights."""
  f32 = np.float32
  npa = lambda a: np.asarray(a, f32)

  c1w, c1b = map(npa, p['conv1'])   # (3,1,3,3), (3,)
  c2w, c2b = map(npa, p['conv2'])   # (3,3,4,4), (3,)
  c3w, c3b = map(npa, p['conv3'])   # (1,3,2,2), (1,)

  # conv1 matmul weight: g1[kh*50 + (2w+kw), co*24 + w] = W1[co,0,kh,kw]
  g1 = np.zeros((150, 128), f32)
  b1v = np.zeros((1, 128), f32)
  for co in range(3):
    b1v[0, co * 24:(co + 1) * 24] = c1b[co]
    for kh in range(3):
      for kw in range(3):
        for w in range(24):
          g1[kh * 50 + 2 * w + kw, co * 24 + w] = c1w[co, 0, kh, kw]

  # conv2 matmul weight over the grouped LHS:
  #   w2r[kh*128 + ci*24 + w, co2*8 + j] = W2[co2,ci,kh,kw] with w = 3j+kw-1
  w2r = np.zeros((512, 32), f32)
  b2v = np.zeros((1, 32), f32)
  for co2 in range(3):
    b2v[0, co2 * 8:(co2 + 1) * 8] = c2b[co2]
    for ci in range(3):
      for kh in range(4):
        for kw in range(4):
          for j in range(8):
            w = 3 * j + kw - 1
            if 0 <= w < 24:              # w == -1 is conv2's column padding
              w2r[kh * 128 + ci * 24 + w, co2 * 8 + j] = c2w[co2, ci, kh, kw]

  # conv3 matmul weight over the flattened conv2 output (lane = i*32+ci2*8+j):
  #   w3g[(p+kh)*32 + ci2*8 + (q+kw), p*7 + q] = W3[0,ci2,kh,kw]
  w3g = np.zeros((256, 49), f32)
  for ci2 in range(3):
    for kh in range(2):
      for kw in range(2):
        for pp in range(7):
          for q in range(7):
            w3g[(pp + kh) * 32 + ci2 * 8 + (q + kw), pp * 7 + q] = (
                c3w[0, ci2, kh, kw])
  b3v = np.full((1, 49), c3b[0], f32)

  def lin(name):
    w, b = p[name]
    return npa(w).T, npa(b).reshape(1, -1)

  w1, b1 = lin('fc1')
  H = w1.shape[1]
  w2, b2 = lin('fc2')            # (H+24, 32)
  w3, b3 = lin('fc3')            # (1, H)
  w4, b4 = lin('fc4')            # (32+H, 32)
  wg1, bg1 = lin('gm1')          # (33, 128)
  wg2, bg2 = lin('gm2')          # (128, 64)
  wg3, bg3 = lin('gm3')          # (64, 1)
  wlk, blk = p['fc_link']        # (24, 49), (24,)

  out = dict(
      g1=g1, b1v=b1v, w2r=w2r, b2v=b2v, w3g=w3g, b3v=b3v,
      wl=npa(wlk).T, bl=npa(blk).reshape(1, -1),
      w1=w1, b1=b1,
      w2a=w2[:H], w2b=w2[H:], b2=b2,
      w3=w3, b3=b3,
      w4a=w4[:32], w4b=w4[32:], b4=b4,
      wg1a=wg1[:32], wg1b=wg1[32:33], bg1=bg1,
      wg2=wg2, bg2=bg2,
      wg3=np.pad(wg3, ((0, 0), (0, 127))),     # lane-dense (64,128) head
      bg3=np.pad(bg3, ((0, 0), (0, 127))),
  )
  return {k: jnp.asarray(v) for k, v in out.items()}


# ---------------------------------------------------------------------------
# Forward wrapper (single pallas_call; per-call glue only touches activations)
# ---------------------------------------------------------------------------

@functools.partial(jax.jit, static_argnums=(9, 10))
def generator_forward(kp, steps, ego_pos, target_pos, traffic_state,
                      topo_link_array, all_evaders_pos, actions, z,
                      batch_size, num_edge):
  assert num_edge == 48, "architecture (fc_link in=49) fixes num_edge = 48"
  B = batch_size
  BP = max(8, -(-B // 8) * 8)                     # pad batch to sublane granule

  # conv1 im2col rows: lhs1[(h,b), kh*50 + c] = xpad[b, 2h+kh, c]
  x = topo_link_array.reshape(B, num_edge, num_edge).astype(jnp.float32)
  xpad = jnp.pad(x, ((0, BP - B), (1, 1), (1, 1)))                 # (BP, 50, 50)
  rows = (2 * jnp.arange(24)[:, None] + jnp.arange(3)[None, :]).reshape(-1)
  lhs1 = (xpad[:, rows, :]                                         # (BP, 72, 50)
          .reshape(BP, 24, 3, 50)
          .transpose(1, 0, 2, 3)
          .reshape(24 * BP, 150))

  s_o = jnp.concatenate([
      steps.reshape(B, -1),
      ego_pos.reshape(B, -1),
      target_pos.reshape(B, -1),
      all_evaders_pos.reshape(B, -1),
      traffic_state.reshape(B, -1),
  ], axis=1).astype(jnp.float32)
  s_o = jnp.pad(s_o, ((0, BP - B), (0, 0)))
  act = jnp.pad(actions.astype(jnp.float32).reshape(B, 1), ((0, BP - B), (0, 0)))
  z_f = jnp.pad(z.reshape(B, -1).astype(jnp.float32), ((0, BP - B), (0, 0)))

  vmem = pl.BlockSpec(memory_space=pltpu.MemorySpace.VMEM)
  args = (lhs1, s_o, act, z_f,
          kp['g1'], kp['b1v'], kp['w2r'], kp['b2v'], kp['w3g'], kp['b3v'],
          kp['wl'], kp['bl'],
          kp['w1'], kp['b1'],
          kp['w2a'], kp['w2b'], kp['b2'],
          kp['w3'], kp['b3'],
          kp['w4a'], kp['w4b'], kp['b4'],
          kp['wg1a'], kp['wg1b'], kp['bg1'],
          kp['wg2'], kp['bg2'],
          kp['wg3'], kp['bg3'])

  H = kp['w1'].shape[1]
  SI = kp['w1'].shape[0]
  flops = 2 * (24 * BP * 150 * 128        # conv1
               + 8 * BP * 512 * 32        # conv2
               + BP * 256 * 49            # conv3
               + BP * 49 * 24             # fc_link
               + BP * SI * H              # fc1
               + BP * (H + 24) * 32       # fc2
               + BP * H                   # fc3
               + BP * (32 + H) * 32       # fc4
               + BP * (33 * 128 + 128 * 64 + 64 * 128))   # g_m
  bytes_accessed = 4 * (sum(int(a.size) for a in args) + BP * 128)

  out = pl.pallas_call(
      _generator_kernel,
      out_shape=jax.ShapeDtypeStruct((BP, 128), jnp.float32),
      in_specs=[vmem] * len(args),
      out_specs=vmem,
      scratch_shapes=[pltpu.VMEM((8 * BP, 512), jnp.float32),   # conv2 grouped LHS
                      pltpu.VMEM((BP, 256), jnp.float32)],      # conv2 output flat
      cost_estimate=pl.CostEstimate(flops=flops,
                                    transcendentals=4 * BP * 32,
                                    bytes_accessed=bytes_accessed),
  )(*args)
  return out[:B, :1]


# ---------------------------------------------------------------------------
# Pure-JAX reference (semantic check against the PyTorch graph)
# ---------------------------------------------------------------------------

def reference_forward(params, steps, ego_pos, target_pos, traffic_state,
                      topo_link_array, all_evaders_pos, actions, z,
                      batch_size, num_edge):
  prec = lax.Precision.HIGHEST

  def conv(x, w, b, stride, pad):
    y = lax.conv_general_dilated(
        x, w, (stride, stride), [(pad, pad), (pad, pad)],
        dimension_numbers=('NCHW', 'OIHW', 'NCHW'), precision=prec)
    return jnp.maximum(y + b.reshape(1, -1, 1, 1), 0.0)

  def elu(x):
    return jnp.where(x > 0, x, jnp.exp(jnp.minimum(x, 0.0)) - 1.0)

  def lrelu(x):
    return jnp.where(x > 0, x, 0.02 * x)

  def linear(x, wb):
    w, b = wb
    return jnp.dot(x, w.T, precision=prec) + b

  x = topo_link_array.reshape(batch_size, -1, num_edge, num_edge).astype(jnp.float32)
  x = conv(x, *params['conv1'], 2, 1)
  x = conv(x, *params['conv2'], 3, 1)
  x = conv(x, *params['conv3'], 1, 0)
  topo = linear(x.reshape(-1, 49), params['fc_link'])

  s_o = jnp.concatenate([steps.reshape(batch_size, -1),
                         ego_pos.reshape(batch_size, -1),
                         target_pos.reshape(batch_size, -1),
                         all_evaders_pos.reshape(batch_size, -1),
                         traffic_state.reshape(batch_size, -1)],
                        axis=1).astype(jnp.float32)
  s_o_f = elu(linear(s_o, params['fc1']))
  s_ = jnp.concatenate([s_o_f, topo], axis=1)
  s_f = elu(linear(s_, params['fc2']))
  a_f = elu(linear(actions.astype(jnp.float32).reshape(batch_size, 1), params['fc3']))
  x_f = jnp.concatenate([s_f, a_f], axis=1)
  features = elu(linear(x_f, params['fc4']))
  f_z = jnp.concatenate(
      [features, z.reshape(batch_size, -1).astype(jnp.float32)], axis=1)
  h1 = lrelu(linear(f_z, params['gm1']))
  h2 = lrelu(linear(h1, params['gm2']))
  return linear(h2, params['gm3'])


# ---------------------------------------------------------------------------
# Main
# ---------------------------------------------------------------------------

if __name__ == "__main__":
  batch = 2                    # params['GAN_batch_size']
  num_edge = 48                # params['num_edge'] (yields 7x7=49 conv output)
  hidden_shape = 32            # params['hidden_shape']
  n_evaders = 3
  # s_o = cat(steps(1), ego(2), target(2), evaders(3*2), traffic(48)) -> 59
  state_input_shape = 1 + 2 + 2 + n_evaders * 2 + num_edge

  key = jax.random.PRNGKey(0)
  pkey, dkey = jax.random.split(key)
  params = init_params(pkey, state_input_shape, hidden_shape)
  kparams = prepare_params(params)     # one-time weight preprocessing

  ks = jax.random.split(dkey, 8)
  steps = jax.random.uniform(ks[0], (batch, 1), jnp.float32)
  ego_pos = jax.random.uniform(ks[1], (batch, 2), jnp.float32)
  target_pos = jax.random.uniform(ks[2], (batch, 2), jnp.float32)
  traffic_state = jax.random.uniform(ks[3], (batch, num_edge), jnp.float32)
  topo_link_array = (jax.random.uniform(ks[4], (batch, num_edge, num_edge))
                     > 0.5).astype(jnp.float32)
  all_evaders_pos = jax.random.uniform(ks[5], (batch, n_evaders, 2), jnp.float32)
  actions = jax.random.randint(ks[6], (batch, 1), 0, 4)
  z = jax.random.normal(ks[7], (batch, 1), jnp.float32)

  out = generator_forward(kparams, steps, ego_pos, target_pos, traffic_state,
                          topo_link_array, all_evaders_pos, actions, z,
                          batch, num_edge)
  out = jax.block_until_ready(out)

  ref = reference_forward(params, steps, ego_pos, target_pos, traffic_state,
                          topo_link_array, all_evaders_pos, actions, z,
                          batch, num_edge)

  assert out.shape == (batch, 1), out.shape
  assert bool(jnp.all(jnp.isfinite(out)))
  # Tolerance note (review): in-kernel dots use Mosaic's default f32 MXU path
  # vs. Precision.HIGHEST in the reference; allow a small precision margin.
  assert bool(jnp.allclose(out, ref, rtol=1e-3, atol=1e-4)), (out, ref)
  print("KERNEL_OK")
</pallas_src>

<mosaic_0001>
module attributes {stable_mosaic.version = 11 : i64} {
  func.func @_generator_kernel(%arg0: memref<192x150xf32, #tpu.memory_space<vmem>>, %arg1: memref<8x59xf32, #tpu.memory_space<vmem>>, %arg2: memref<8x1xf32, #tpu.memory_space<vmem>>, %arg3: memref<8x1xf32, #tpu.memory_space<vmem>>, %arg4: memref<150x128xf32, #tpu.memory_space<vmem>>, %arg5: memref<1x128xf32, #tpu.memory_space<vmem>>, %arg6: memref<512x32xf32, #tpu.memory_space<vmem>>, %arg7: memref<1x32xf32, #tpu.memory_space<vmem>>, %arg8: memref<256x49xf32, #tpu.memory_space<vmem>>, %arg9: memref<1x49xf32, #tpu.memory_space<vmem>>, %arg10: memref<49x24xf32, #tpu.memory_space<vmem>>, %arg11: memref<1x24xf32, #tpu.memory_space<vmem>>, %arg12: memref<59x32xf32, #tpu.memory_space<vmem>>, %arg13: memref<1x32xf32, #tpu.memory_space<vmem>>, %arg14: memref<32x32xf32, #tpu.memory_space<vmem>>, %arg15: memref<24x32xf32, #tpu.memory_space<vmem>>, %arg16: memref<1x32xf32, #tpu.memory_space<vmem>>, %arg17: memref<1x32xf32, #tpu.memory_space<vmem>>, %arg18: memref<1x32xf32, #tpu.memory_space<vmem>>, %arg19: memref<32x32xf32, #tpu.memory_space<vmem>>, %arg20: memref<32x32xf32, #tpu.memory_space<vmem>>, %arg21: memref<1x32xf32, #tpu.memory_space<vmem>>, %arg22: memref<32x128xf32, #tpu.memory_space<vmem>>, %arg23: memref<1x128xf32, #tpu.memory_space<vmem>>, %arg24: memref<1x128xf32, #tpu.memory_space<vmem>>, %arg25: memref<128x64xf32, #tpu.memory_space<vmem>>, %arg26: memref<1x64xf32, #tpu.memory_space<vmem>>, %arg27: memref<64x128xf32, #tpu.memory_space<vmem>>, %arg28: memref<1x128xf32, #tpu.memory_space<vmem>>, %arg29: memref<8x128xf32, #tpu.memory_space<vmem>>, %arg30: memref<64x512xf32, #tpu.memory_space<vmem>>, %arg31: memref<8x256xf32, #tpu.memory_space<vmem>>) attributes {dimension_semantics = [], scalar_prefetch = 0 : i64, scratch_operands = 2 : i64, tpu.core_type = #tpu.core_type<tc>} {
    %c0 = arith.constant 0 : index
    %c0_0 = arith.constant 0 : index
    %0 = vector.load %arg0[%c0, %c0_0] : memref<192x150xf32, #tpu.memory_space<vmem>>, vector<192x150xf32>
    %c0_1 = arith.constant 0 : index
    %c0_2 = arith.constant 0 : index
    %1 = vector.load %arg4[%c0_1, %c0_2] : memref<150x128xf32, #tpu.memory_space<vmem>>, vector<150x128xf32>
    %cst = arith.constant dense<0.000000e+00> : vector<192x128xf32>
    %2 = tpu.matmul %0, %1, %cst {dimension_numbers = #tpu.dot_dimension_numbers<[1], [0], [0], [1], [0, 0, 1, 1], [], []>} : vector<192x150xf32>, vector<150x128xf32>, vector<192x128xf32> -> vector<192x128xf32>
    %c0_3 = arith.constant 0 : index
    %c0_4 = arith.constant 0 : index
    %3 = vector.load %arg5[%c0_3, %c0_4] : memref<1x128xf32, #tpu.memory_space<vmem>>, vector<1x128xf32>
    %4 = vector.broadcast %3 : vector<1x128xf32> to vector<192x128xf32>
    %5 = arith.addf %2, %4 : vector<192x128xf32>
    %cst_5 = arith.constant 0.000000e+00 : f32
    %6 = vector.broadcast %cst_5 : f32 to vector<192x128xf32>
    %7 = arith.maximumf %5, %6 : vector<192x128xf32>
    %cst_6 = arith.constant 0.000000e+00 : f32
    %8 = vector.broadcast %cst_6 : f32 to vector<8x128xf32>
    %c0_7 = arith.constant 0 : index
    %c0_8 = arith.constant 0 : index
    %9 = vector.load %arg30[%c0_7, %c0_8] : memref<64x512xf32, #tpu.memory_space<vmem>>, vector<8x128xf32>
    tpu.vector_store %arg30[%c0_7, %c0_8], %8 {strides = array<i32>} : memref<64x512xf32, #tpu.memory_space<vmem>>, vector<8x128xf32>,
    %10 = vector.extract_strided_slice %7 {offsets = [0, 0], sizes = [8, 128], strides = [1, 1]} : vector<192x128xf32> to vector<8x128xf32>
    %c0_9 = arith.constant 0 : index
    %c128 = arith.constant 128 : index
    %11 = vector.load %arg30[%c0_9, %c128] : memref<64x512xf32, #tpu.memory_space<vmem>>, vector<8x128xf32>
    tpu.vector_store %arg30[%c0_9, %c128], %10 {strides = array<i32>} : memref<64x512xf32, #tpu.memory_space<vmem>>, vector<8x128xf32>,
    %12 = vector.extract_strided_slice %7 {offsets = [8, 0], sizes = [8, 128], strides = [1, 1]} : vector<192x128xf32> to vector<8x128xf32>
    %c0_10 = arith.constant 0 : index
    %c256 = arith.constant 256 : index
    %13 = vector.load %arg30[%c0_10, %c256] : memref<64x512xf32, #tpu.memory_space<vmem>>, vector<8x128xf32>
    tpu.vector_store %arg30[%c0_10, %c256], %12 {strides = array<i32>} : memref<64x512xf32, #tpu.memory_space<vmem>>, vector<8x128xf32>,
    %14 = vector.extract_strided_slice %7 {offsets = [16, 0], sizes = [8, 128], strides = [1, 1]} : vector<192x128xf32> to vector<8x128xf32>
    %c0_11 = arith.constant 0 : index
    %c384 = arith.constant 384 : index
    %15 = vector.load %arg30[%c0_11, %c384] : memref<64x512xf32, #tpu.memory_space<vmem>>, vector<8x128xf32>
    tpu.vector_store %arg30[%c0_11, %c384], %14 {strides = array<i32>} : memref<64x512xf32, #tpu.memory_space<vmem>>, vector<8x128xf32>,
    %16 = vector.extract_strided_slice %7 {offsets = [16, 0], sizes = [8, 128], strides = [1, 1]} : vector<192x128xf32> to vector<8x128xf32>
    %c8 = arith.constant 8 : index
    %c0_12 = arith.constant 0 : index
    %17 = vector.load %arg30[%c8, %c0_12] : memref<64x512xf32, #tpu.memory_space<vmem>>, vector<8x128xf32>
    tpu.vector_store %arg30[%c8, %c0_12], %16 {strides = array<i32>} : memref<64x512xf32, #tpu.memory_space<vmem>>, vector<8x128xf32>,
    %18 = vector.extract_strided_slice %7 {offsets = [24, 0], sizes = [8, 128], strides = [1, 1]} : vector<192x128xf32> to vector<8x128xf32>
    %c8_13 = arith.constant 8 : index
    %c128_14 = arith.constant 128 : index
    %19 = vector.load %arg30[%c8_13, %c128_14] : memref<64x512xf32, #tpu.memory_space<vmem>>, vector<8x128xf32>
    tpu.vector_store %arg30[%c8_13, %c128_14], %18 {strides = array<i32>} : memref<64x512xf32, #tpu.memory_space<vmem>>, vector<8x128xf32>,
    %20 = vector.extract_strided_slice %7 {offsets = [32, 0], sizes = [8, 128], strides = [1, 1]} : vector<192x128xf32> to vector<8x128xf32>
    %c8_15 = arith.constant 8 : index
    %c256_16 = arith.constant 256 : index
    %21 = vector.load %arg30[%c8_15, %c256_16] : memref<64x512xf32, #tpu.memory_space<vmem>>, vector<8x128xf32>
    tpu.vector_store %arg30[%c8_15, %c256_16], %20 {strides = array<i32>} : memref<64x512xf32, #tpu.memory_space<vmem>>, vector<8x128xf32>,
    %22 = vector.extract_strided_slice %7 {offsets = [40, 0], sizes = [8, 128], strides = [1, 1]} : vector<192x128xf32> to vector<8x128xf32>
    %c8_17 = arith.constant 8 : index
    %c384_18 = arith.constant 384 : index
    %23 = vector.load %arg30[%c8_17, %c384_18] : memref<64x512xf32, #tpu.memory_space<vmem>>, vector<8x128xf32>
    tpu.vector_store %arg30[%c8_17, %c384_18], %22 {strides = array<i32>} : memref<64x512xf32, #tpu.memory_space<vmem>>, vector<8x128xf32>,
    %24 = vector.extract_strided_slice %7 {offsets = [40, 0], sizes = [8, 128], strides = [1, 1]} : vector<192x128xf32> to vector<8x128xf32>
    %c16 = arith.constant 16 : index
    %c0_19 = arith.constant 0 : index
    %25 = vector.load %arg30[%c16, %c0_19] : memref<64x512xf32, #tpu.memory_space<vmem>>, vector<8x128xf32>
    tpu.vector_store %arg30[%c16, %c0_19], %24 {strides = array<i32>} : memref<64x512xf32, #tpu.memory_space<vmem>>, vector<8x128xf32>,
    %26 = vector.extract_strided_slice %7 {offsets = [48, 0], sizes = [8, 128], strides = [1, 1]} : vector<192x128xf32> to vector<8x128xf32>
    %c16_20 = arith.constant 16 : index
    %c128_21 = arith.constant 128 : index
    %27 = vector.load %arg30[%c16_20, %c128_21] : memref<64x512xf32, #tpu.memory_space<vmem>>, vector<8x128xf32>
    tpu.vector_store %arg30[%c16_20, %c128_21], %26 {strides = array<i32>} : memref<64x512xf32, #tpu.memory_space<vmem>>, vector<8x128xf32>,
    %28 = vector.extract_strided_slice %7 {offsets = [56, 0], sizes = [8, 128], strides = [1, 1]} : vector<192x128xf32> to vector<8x128xf32>
    %c16_22 = arith.constant 16 : index
    %c256_23 = arith.constant 256 : index
    %29 = vector.load %arg30[%c16_22, %c256_23] : memref<64x512xf32, #tpu.memory_space<vmem>>, vector<8x128xf32>
    tpu.vector_store %arg30[%c16_22, %c256_23], %28 {strides = array<i32>} : memref<64x512xf32, #tpu.memory_space<vmem>>, vector<8x128xf32>,
    %30 = vector.extract_strided_slice %7 {offsets = [64, 0], sizes = [8, 128], strides = [1, 1]} : vector<192x128xf32> to vector<8x128xf32>
    %c16_24 = arith.constant 16 : index
    %c384_25 = arith.constant 384 : index
    %31 = vector.load %arg30[%c16_24, %c384_25] : memref<64x512xf32, #tpu.memory_space<vmem>>, vector<8x128xf32>
    tpu.vector_store %arg30[%c16_24, %c384_25], %30 {strides = array<i32>} : memref<64x512xf32, #tpu.memory_space<vmem>>, vector<8x128xf32>,
    %32 = vector.extract_strided_slice %7 {offsets = [64, 0], sizes = [8, 128], strides = [1, 1]} : vector<192x128xf32> to vector<8x128xf32>
    %c24 = arith.constant 24 : index
    %c0_26 = arith.constant 0 : index
    %33 = vector.load %arg30[%c24, %c0_26] : memref<64x512xf32, #tpu.memory_space<vmem>>, vector<8x128xf32>
    tpu.vector_store %arg30[%c24, %c0_26], %32 {strides = array<i32>} : memref<64x512xf32, #tpu.memory_space<vmem>>, vector<8x128xf32>,
    %34 = vector.extract_strided_slice %7 {offsets = [72, 0], sizes = [8, 128], strides = [1, 1]} : vector<192x128xf32> to vector<8x128xf32>
    %c24_27 = arith.constant 24 : index
    %c128_28 = arith.constant 128 : index
    %35 = vector.load %arg30[%c24_27, %c128_28] : memref<64x512xf32, #tpu.memory_space<vmem>>, vector<8x128xf32>
    tpu.vector_store %arg30[%c24_27, %c128_28], %34 {strides = array<i32>} : memref<64x512xf32, #tpu.memory_space<vmem>>, vector<8x128xf32>,
    %36 = vector.extract_strided_slice %7 {offsets = [80, 0], sizes = [8, 128], strides = [1, 1]} : vector<192x128xf32> to vector<8x128xf32>
    %c24_29 = arith.constant 24 : index
    %c256_30 = arith.constant 256 : index
    %37 = vector.load %arg30[%c24_29, %c256_30] : memref<64x512xf32, #tpu.memory_space<vmem>>, vector<8x128xf32>
    tpu.vector_store %arg30[%c24_29, %c256_30], %36 {strides = array<i32>} : memref<64x512xf32, #tpu.memory_space<vmem>>, vector<8x128xf32>,
    %38 = vector.extract_strided_slice %7 {offsets = [88, 0], sizes = [8, 128], strides = [1, 1]} : vector<192x128xf32> to vector<8x128xf32>
    %c24_31 = arith.constant 24 : index
    %c384_32 = arith.constant 384 : index
    %39 = vector.load %arg30[%c24_31, %c384_32] : memref<64x512xf32, #tpu.memory_space<vmem>>, vector<8x128xf32>
    tpu.vector_store %arg30[%c24_31, %c384_32], %38 {strides = array<i32>} : memref<64x512xf32, #tpu.memory_space<vmem>>, vector<8x128xf32>,
    %40 = vector.extract_strided_slice %7 {offsets = [88, 0], sizes = [8, 128], strides = [1, 1]} : vector<192x128xf32> to vector<8x128xf32>
    %c32 = arith.constant 32 : index
    %c0_33 = arith.constant 0 : index
    %41 = vector.load %arg30[%c32, %c0_33] : memref<64x512xf32, #tpu.memory_space<vmem>>, vector<8x128xf32>
    tpu.vector_store %arg30[%c32, %c0_33], %40 {strides = array<i32>} : memref<64x512xf32, #tpu.memory_space<vmem>>, vector<8x128xf32>,
    %42 = vector.extract_strided_slice %7 {offsets = [96, 0], sizes = [8, 128], strides = [1, 1]} : vector<192x128xf32> to vector<8x128xf32>
    %c32_34 = arith.constant 32 : index
    %c128_35 = arith.constant 128 : index
    %43 = vector.load %arg30[%c32_34, %c128_35] : memref<64x512xf32, #tpu.memory_space<vmem>>, vector<8x128xf32>
    tpu.vector_store %arg30[%c32_34, %c128_35], %42 {strides = array<i32>} : memref<64x512xf32, #tpu.memory_space<vmem>>, vector<8x128xf32>,
    %44 = vector.extract_strided_slice %7 {offsets = [104, 0], sizes = [8, 128], strides = [1, 1]} : vector<192x128xf32> to vector<8x128xf32>
    %c32_36 = arith.constant 32 : index
    %c256_37 = arith.constant 256 : index
    %45 = vector.load %arg30[%c32_36, %c256_37] : memref<64x512xf32, #tpu.memory_space<vmem>>, vector<8x128xf32>
    tpu.vector_store %arg30[%c32_36, %c256_37], %44 {strides = array<i32>} : memref<64x512xf32, #tpu.memory_space<vmem>>, vector<8x128xf32>,
    %46 = vector.extract_strided_slice %7 {offsets = [112, 0], sizes = [8, 128], strides = [1, 1]} : vector<192x128xf32> to vector<8x128xf32>
    %c32_38 = arith.constant 32 : index
    %c384_39 = arith.constant 384 : index
    %47 = vector.load %arg30[%c32_38, %c384_39] : memref<64x512xf32, #tpu.memory_space<vmem>>, vector<8x128xf32>
    tpu.vector_store %arg30[%c32_38, %c384_39], %46 {strides = array<i32>} : memref<64x512xf32, #tpu.memory_space<vmem>>, vector<8x128xf32>,
    %48 = vector.extract_strided_slice %7 {offsets = [112, 0], sizes = [8, 128], strides = [1, 1]} : vector<192x128xf32> to vector<8x128xf32>
    %c40 = arith.constant 40 : index
    %c0_40 = arith.constant 0 : index
    %49 = vector.load %arg30[%c40, %c0_40] : memref<64x512xf32, #tpu.memory_space<vmem>>, vector<8x128xf32>
    tpu.vector_store %arg30[%c40, %c0_40], %48 {strides = array<i32>} : memref<64x512xf32, #tpu.memory_space<vmem>>, vector<8x128xf32>,
    %50 = vector.extract_strided_slice %7 {offsets = [120, 0], sizes = [8, 128], strides = [1, 1]} : vector<192x128xf32> to vector<8x128xf32>
    %c40_41 = arith.constant 40 : index
    %c128_42 = arith.constant 128 : index
    %51 = vector.load %arg30[%c40_41, %c128_42] : memref<64x512xf32, #tpu.memory_space<vmem>>, vector<8x128xf32>
    tpu.vector_store %arg30[%c40_41, %c128_42], %50 {strides = array<i32>} : memref<64x512xf32, #tpu.memory_space<vmem>>, vector<8x128xf32>,
    %52 = vector.extract_strided_slice %7 {offsets = [128, 0], sizes = [8, 128], strides = [1, 1]} : vector<192x128xf32> to vector<8x128xf32>
    %c40_43 = arith.constant 40 : index
    %c256_44 = arith.constant 256 : index
    %53 = vector.load %arg30[%c40_43, %c256_44] : memref<64x512xf32, #tpu.memory_space<vmem>>, vector<8x128xf32>
    tpu.vector_store %arg30[%c40_43, %c256_44], %52 {strides = array<i32>} : memref<64x512xf32, #tpu.memory_space<vmem>>, vector<8x128xf32>,
    %54 = vector.extract_strided_slice %7 {offsets = [136, 0], sizes = [8, 128], strides = [1, 1]} : vector<192x128xf32> to vector<8x128xf32>
    %c40_45 = arith.constant 40 : index
    %c384_46 = arith.constant 384 : index
    %55 = vector.load %arg30[%c40_45, %c384_46] : memref<64x512xf32, #tpu.memory_space<vmem>>, vector<8x128xf32>
    tpu.vector_store %arg30[%c40_45, %c384_46], %54 {strides = array<i32>} : memref<64x512xf32, #tpu.memory_space<vmem>>, vector<8x128xf32>,
    %56 = vector.extract_strided_slice %7 {offsets = [136, 0], sizes = [8, 128], strides = [1, 1]} : vector<192x128xf32> to vector<8x128xf32>
    %c48 = arith.constant 48 : index
    %c0_47 = arith.constant 0 : index
    %57 = vector.load %arg30[%c48, %c0_47] : memref<64x512xf32, #tpu.memory_space<vmem>>, vector<8x128xf32>
    tpu.vector_store %arg30[%c48, %c0_47], %56 {strides = array<i32>} : memref<64x512xf32, #tpu.memory_space<vmem>>, vector<8x128xf32>,
    %58 = vector.extract_strided_slice %7 {offsets = [144, 0], sizes = [8, 128], strides = [1, 1]} : vector<192x128xf32> to vector<8x128xf32>
    %c48_48 = arith.constant 48 : index
    %c128_49 = arith.constant 128 : index
    %59 = vector.load %arg30[%c48_48, %c128_49] : memref<64x512xf32, #tpu.memory_space<vmem>>, vector<8x128xf32>
    tpu.vector_store %arg30[%c48_48, %c128_49], %58 {strides = array<i32>} : memref<64x512xf32, #tpu.memory_space<vmem>>, vector<8x128xf32>,
    %60 = vector.extract_strided_slice %7 {offsets = [152, 0], sizes = [8, 128], strides = [1, 1]} : vector<192x128xf32> to vector<8x128xf32>
    %c48_50 = arith.constant 48 : index
    %c256_51 = arith.constant 256 : index
    %61 = vector.load %arg30[%c48_50, %c256_51] : memref<64x512xf32, #tpu.memory_space<vmem>>, vector<8x128xf32>
    tpu.vector_store %arg30[%c48_50, %c256_51], %60 {strides = array<i32>} : memref<64x512xf32, #tpu.memory_space<vmem>>, vector<8x128xf32>,
    %62 = vector.extract_strided_slice %7 {offsets = [160, 0], sizes = [8, 128], strides = [1, 1]} : vector<192x128xf32> to vector<8x128xf32>
    %c48_52 = arith.constant 48 : index
    %c384_53 = arith.constant 384 : index
    %63 = vector.load %arg30[%c48_52, %c384_53] : memref<64x512xf32, #tpu.memory_space<vmem>>, vector<8x128xf32>
    tpu.vector_store %arg30[%c48_52, %c384_53], %62 {strides = array<i32>} : memref<64x512xf32, #tpu.memory_space<vmem>>, vector<8x128xf32>,
    %64 = vector.extract_strided_slice %7 {offsets = [160, 0], sizes = [8, 128], strides = [1, 1]} : vector<192x128xf32> to vector<8x128xf32>
    %c56 = arith.constant 56 : index
    %c0_54 = arith.constant 0 : index
    %65 = vector.load %arg30[%c56, %c0_54] : memref<64x512xf32, #tpu.memory_space<vmem>>, vector<8x128xf32>
    tpu.vector_store %arg30[%c56, %c0_54], %64 {strides = array<i32>} : memref<64x512xf32, #tpu.memory_space<vmem>>, vector<8x128xf32>,
    %66 = vector.extract_strided_slice %7 {offsets = [168, 0], sizes = [8, 128], strides = [1, 1]} : vector<192x128xf32> to vector<8x128xf32>
    %c56_55 = arith.constant 56 : index
    %c128_56 = arith.constant 128 : index
    %67 = vector.load %arg30[%c56_55, %c128_56] : memref<64x512xf32, #tpu.memory_space<vmem>>, vector<8x128xf32>
    tpu.vector_store %arg30[%c56_55, %c128_56], %66 {strides = array<i32>} : memref<64x512xf32, #tpu.memory_space<vmem>>, vector<8x128xf32>,
    %68 = vector.extract_strided_slice %7 {offsets = [176, 0], sizes = [8, 128], strides = [1, 1]} : vector<192x128xf32> to vector<8x128xf32>
    %c56_57 = arith.constant 56 : index
    %c256_58 = arith.constant 256 : index
    %69 = vector.load %arg30[%c56_57, %c256_58] : memref<64x512xf32, #tpu.memory_space<vmem>>, vector<8x128xf32>
    tpu.vector_store %arg30[%c56_57, %c256_58], %68 {strides = array<i32>} : memref<64x512xf32, #tpu.memory_space<vmem>>, vector<8x128xf32>,
    %70 = vector.extract_strided_slice %7 {offsets = [184, 0], sizes = [8, 128], strides = [1, 1]} : vector<192x128xf32> to vector<8x128xf32>
    %c56_59 = arith.constant 56 : index
    %c384_60 = arith.constant 384 : index
    %71 = vector.load %arg30[%c56_59, %c384_60] : memref<64x512xf32, #tpu.memory_space<vmem>>, vector<8x128xf32>
    tpu.vector_store %arg30[%c56_59, %c384_60], %70 {strides = array<i32>} : memref<64x512xf32, #tpu.memory_space<vmem>>, vector<8x128xf32>,
    %c0_61 = arith.constant 0 : index
    %c0_62 = arith.constant 0 : index
    %72 = vector.load %arg30[%c0_61, %c0_62] : memref<64x512xf32, #tpu.memory_space<vmem>>, vector<64x512xf32>
    %c0_63 = arith.constant 0 : index
    %c0_64 = arith.constant 0 : index
    %73 = vector.load %arg6[%c0_63, %c0_64] : memref<512x32xf32, #tpu.memory_space<vmem>>, vector<512x32xf32>
    %cst_65 = arith.constant dense<0.000000e+00> : vector<64x32xf32>
    %74 = tpu.matmul %72, %73, %cst_65 {dimension_numbers = #tpu.dot_dimension_numbers<[1], [0], [0], [1], [0, 0, 1, 1], [], []>} : vector<64x512xf32>, vector<512x32xf32>, vector<64x32xf32> -> vector<64x32xf32>
    %c0_66 = arith.constant 0 : index
    %c0_67 = arith.constant 0 : index
    %75 = vector.load %arg7[%c0_66, %c0_67] : memref<1x32xf32, #tpu.memory_space<vmem>>, vector<1x32xf32>
    %76 = vector.broadcast %75 : vector<1x32xf32> to vector<64x32xf32>
    %77 = arith.addf %74, %76 : vector<64x32xf32>
    %cst_68 = arith.constant 0.000000e+00 : f32
    %78 = vector.broadcast %cst_68 : f32 to vector<64x32xf32>
    %79 = arith.maximumf %77, %78 : vector<64x32xf32>
    %80 = vector.extract_strided_slice %79 {offsets = [0, 0], sizes = [8, 32], strides = [1, 1]} : vector<64x32xf32> to vector<8x32xf32>
    %c0_69 = arith.constant 0 : index
    %c0_70 = arith.constant 0 : index
    %81 = vector.load %arg31[%c0_69, %c0_70] : memref<8x256xf32, #tpu.memory_space<vmem>>, vector<8x32xf32>
    tpu.vector_store %arg31[%c0_69, %c0_70], %80 {strides = array<i32>} : memref<8x256xf32, #tpu.memory_space<vmem>>, vector<8x32xf32>,
    %82 = vector.extract_strided_slice %79 {offsets = [8, 0], sizes = [8, 32], strides = [1, 1]} : vector<64x32xf32> to vector<8x32xf32>
    %c0_71 = arith.constant 0 : index
    %c32_72 = arith.constant 32 : index
    %83 = vector.load %arg31[%c0_71, %c32_72] : memref<8x256xf32, #tpu.memory_space<vmem>>, vector<8x32xf32>
    tpu.vector_store %arg31[%c0_71, %c32_72], %82 {strides = array<i32>} : memref<8x256xf32, #tpu.memory_space<vmem>>, vector<8x32xf32>,
    %84 = vector.extract_strided_slice %79 {offsets = [16, 0], sizes = [8, 32], strides = [1, 1]} : vector<64x32xf32> to vector<8x32xf32>
    %c0_73 = arith.constant 0 : index
    %c64 = arith.constant 64 : index
    %85 = vector.load %arg31[%c0_73, %c64] : memref<8x256xf32, #tpu.memory_space<vmem>>, vector<8x32xf32>
    tpu.vector_store %arg31[%c0_73, %c64], %84 {strides = array<i32>} : memref<8x256xf32, #tpu.memory_space<vmem>>, vector<8x32xf32>,
    %86 = vector.extract_strided_slice %79 {offsets = [24, 0], sizes = [8, 32], strides = [1, 1]} : vector<64x32xf32> to vector<8x32xf32>
    %c0_74 = arith.constant 0 : index
    %c96 = arith.constant 96 : index
    %87 = vector.load %arg31[%c0_74, %c96] : memref<8x256xf32, #tpu.memory_space<vmem>>, vector<8x32xf32>
    tpu.vector_store %arg31[%c0_74, %c96], %86 {strides = array<i32>} : memref<8x256xf32, #tpu.memory_space<vmem>>, vector<8x32xf32>,
    %88 = vector.extract_strided_slice %79 {offsets = [32, 0], sizes = [8, 32], strides = [1, 1]} : vector<64x32xf32> to vector<8x32xf32>
    %c0_75 = arith.constant 0 : index
    %c128_76 = arith.constant 128 : index
    %89 = vector.load %arg31[%c0_75, %c128_76] : memref<8x256xf32, #tpu.memory_space<vmem>>, vector<8x32xf32>
    tpu.vector_store %arg31[%c0_75, %c128_76], %88 {strides = array<i32>} : memref<8x256xf32, #tpu.memory_space<vmem>>, vector<8x32xf32>,
    %90 = vector.extract_strided_slice %79 {offsets = [40, 0], sizes = [8, 32], strides = [1, 1]} : vector<64x32xf32> to vector<8x32xf32>
    %c0_77 = arith.constant 0 : index
    %c160 = arith.constant 160 : index
    %91 = vector.load %arg31[%c0_77, %c160] : memref<8x256xf32, #tpu.memory_space<vmem>>, vector<8x32xf32>
    tpu.vector_store %arg31[%c0_77, %c160], %90 {strides = array<i32>} : memref<8x256xf32, #tpu.memory_space<vmem>>, vector<8x32xf32>,
    %92 = vector.extract_strided_slice %79 {offsets = [48, 0], sizes = [8, 32], strides = [1, 1]} : vector<64x32xf32> to vector<8x32xf32>
    %c0_78 = arith.constant 0 : index
    %c192 = arith.constant 192 : index
    %93 = vector.load %arg31[%c0_78, %c192] : memref<8x256xf32, #tpu.memory_space<vmem>>, vector<8x32xf32>
    tpu.vector_store %arg31[%c0_78, %c192], %92 {strides = array<i32>} : memref<8x256xf32, #tpu.memory_space<vmem>>, vector<8x32xf32>,
    %94 = vector.extract_strided_slice %79 {offsets = [56, 0], sizes = [8, 32], strides = [1, 1]} : vector<64x32xf32> to vector<8x32xf32>
    %c0_79 = arith.constant 0 : index
    %c224 = arith.constant 224 : index
    %95 = vector.load %arg31[%c0_79, %c224] : memref<8x256xf32, #tpu.memory_space<vmem>>, vector<8x32xf32>
    tpu.vector_store %arg31[%c0_79, %c224], %94 {strides = array<i32>} : memref<8x256xf32, #tpu.memory_space<vmem>>, vector<8x32xf32>,
    %c0_80 = arith.constant 0 : index
    %c0_81 = arith.constant 0 : index
    %96 = vector.load %arg31[%c0_80, %c0_81] : memref<8x256xf32, #tpu.memory_space<vmem>>, vector<8x256xf32>
    %c0_82 = arith.constant 0 : index
    %c0_83 = arith.constant 0 : index
    %97 = vector.load %arg8[%c0_82, %c0_83] : memref<256x49xf32, #tpu.memory_space<vmem>>, vector<256x49xf32>
    %cst_84 = arith.constant dense<0.000000e+00> : vector<8x49xf32>
    %98 = tpu.matmul %96, %97, %cst_84 {dimension_numbers = #tpu.dot_dimension_numbers<[1], [0], [0], [1], [0, 0, 1, 1], [], []>} : vector<8x256xf32>, vector<256x49xf32>, vector<8x49xf32> -> vector<8x49xf32>
    %c0_85 = arith.constant 0 : index
    %c0_86 = arith.constant 0 : index
    %99 = vector.load %arg9[%c0_85, %c0_86] : memref<1x49xf32, #tpu.memory_space<vmem>>, vector<1x49xf32>
    %100 = vector.broadcast %99 : vector<1x49xf32> to vector<8x49xf32>
    %101 = arith.addf %98, %100 : vector<8x49xf32>
    %cst_87 = arith.constant 0.000000e+00 : f32
    %102 = vector.broadcast %cst_87 : f32 to vector<8x49xf32>
    %103 = arith.maximumf %101, %102 : vector<8x49xf32>
    %c0_88 = arith.constant 0 : index
    %c0_89 = arith.constant 0 : index
    %104 = vector.load %arg10[%c0_88, %c0_89] : memref<49x24xf32, #tpu.memory_space<vmem>>, vector<49x24xf32>
    %cst_90 = arith.constant dense<0.000000e+00> : vector<8x24xf32>
    %105 = tpu.matmul %103, %104, %cst_90 {dimension_numbers = #tpu.dot_dimension_numbers<[1], [0], [0], [1], [0, 0, 1, 1], [], []>} : vector<8x49xf32>, vector<49x24xf32>, vector<8x24xf32> -> vector<8x24xf32>
    %c0_91 = arith.constant 0 : index
    %c0_92 = arith.constant 0 : index
    %106 = vector.load %arg11[%c0_91, %c0_92] : memref<1x24xf32, #tpu.memory_space<vmem>>, vector<1x24xf32>
    %107 = vector.broadcast %106 : vector<1x24xf32> to vector<8x24xf32>
    %108 = arith.addf %105, %107 : vector<8x24xf32>
    %c0_93 = arith.constant 0 : index
    %c0_94 = arith.constant 0 : index
    %109 = vector.load %arg1[%c0_93, %c0_94] : memref<8x59xf32, #tpu.memory_space<vmem>>, vector<8x59xf32>
    %c0_95 = arith.constant 0 : index
    %c0_96 = arith.constant 0 : index
    %110 = vector.load %arg12[%c0_95, %c0_96] : memref<59x32xf32, #tpu.memory_space<vmem>>, vector<59x32xf32>
    %cst_97 = arith.constant dense<0.000000e+00> : vector<8x32xf32>
    %111 = tpu.matmul %109, %110, %cst_97 {dimension_numbers = #tpu.dot_dimension_numbers<[1], [0], [0], [1], [0, 0, 1, 1], [], []>} : vector<8x59xf32>, vector<59x32xf32>, vector<8x32xf32> -> vector<8x32xf32>
    %c0_98 = arith.constant 0 : index
    %c0_99 = arith.constant 0 : index
    %112 = vector.load %arg13[%c0_98, %c0_99] : memref<1x32xf32, #tpu.memory_space<vmem>>, vector<1x32xf32>
    %113 = vector.broadcast %112 : vector<1x32xf32> to vector<8x32xf32>
    %114 = arith.addf %111, %113 : vector<8x32xf32>
    %cst_100 = arith.constant 0.000000e+00 : f32
    %115 = vector.broadcast %cst_100 : f32 to vector<8x32xf32>
    %116 = arith.cmpf ogt, %114, %115 : vector<8x32xf32>
    %cst_101 = arith.constant 0.000000e+00 : f32
    %117 = vector.broadcast %cst_101 : f32 to vector<8x32xf32>
    %118 = arith.minimumf %114, %117 : vector<8x32xf32>
    %119 = math.exp %118 : vector<8x32xf32>
    %cst_102 = arith.constant 1.000000e+00 : f32
    %120 = vector.broadcast %cst_102 : f32 to vector<8x32xf32>
    %121 = arith.subf %119, %120 : vector<8x32xf32>
    %122 = arith.select %116, %114, %121 : vector<8x32xi1>, vector<8x32xf32>
    %c0_103 = arith.constant 0 : index
    %c0_104 = arith.constant 0 : index
    %123 = vector.load %arg14[%c0_103, %c0_104] : memref<32x32xf32, #tpu.memory_space<vmem>>, vector<32x32xf32>
    %cst_105 = arith.constant dense<0.000000e+00> : vector<8x32xf32>
    %124 = tpu.matmul %122, %123, %cst_105 {dimension_numbers = #tpu.dot_dimension_numbers<[1], [0], [0], [1], [0, 0, 1, 1], [], []>} : vector<8x32xf32>, vector<32x32xf32>, vector<8x32xf32> -> vector<8x32xf32>
    %c0_106 = arith.constant 0 : index
    %c0_107 = arith.constant 0 : index
    %125 = vector.load %arg15[%c0_106, %c0_107] : memref<24x32xf32, #tpu.memory_space<vmem>>, vector<24x32xf32>
    %cst_108 = arith.constant dense<0.000000e+00> : vector<8x32xf32>
    %126 = tpu.matmul %108, %125, %cst_108 {dimension_numbers = #tpu.dot_dimension_numbers<[1], [0], [0], [1], [0, 0, 1, 1], [], []>} : vector<8x24xf32>, vector<24x32xf32>, vector<8x32xf32> -> vector<8x32xf32>
    %127 = arith.addf %124, %126 : vector<8x32xf32>
    %c0_109 = arith.constant 0 : index
    %c0_110 = arith.constant 0 : index
    %128 = vector.load %arg16[%c0_109, %c0_110] : memref<1x32xf32, #tpu.memory_space<vmem>>, vector<1x32xf32>
    %129 = vector.broadcast %128 : vector<1x32xf32> to vector<8x32xf32>
    %130 = arith.addf %127, %129 : vector<8x32xf32>
    %cst_111 = arith.constant 0.000000e+00 : f32
    %131 = vector.broadcast %cst_111 : f32 to vector<8x32xf32>
    %132 = arith.cmpf ogt, %130, %131 : vector<8x32xf32>
    %cst_112 = arith.constant 0.000000e+00 : f32
    %133 = vector.broadcast %cst_112 : f32 to vector<8x32xf32>
    %134 = arith.minimumf %130, %133 : vector<8x32xf32>
    %135 = math.exp %134 : vector<8x32xf32>
    %cst_113 = arith.constant 1.000000e+00 : f32
    %136 = vector.broadcast %cst_113 : f32 to vector<8x32xf32>
    %137 = arith.subf %135, %136 : vector<8x32xf32>
    %138 = arith.select %132, %130, %137 : vector<8x32xi1>, vector<8x32xf32>
    %c0_114 = arith.constant 0 : index
    %c0_115 = arith.constant 0 : index
    %139 = vector.load %arg2[%c0_114, %c0_115] : memref<8x1xf32, #tpu.memory_space<vmem>>, vector<8x1xf32>
    %c0_116 = arith.constant 0 : index
    %c0_117 = arith.constant 0 : index
    %140 = vector.load %arg17[%c0_116, %c0_117] : memref<1x32xf32, #tpu.memory_space<vmem>>, vector<1x32xf32>
    %141 = vector.broadcast %139 : vector<8x1xf32> to vector<8x32xf32>
    %142 = vector.broadcast %140 : vector<1x32xf32> to vector<8x32xf32>
    %143 = arith.mulf %141, %142 : vector<8x32xf32>
    %c0_118 = arith.constant 0 : index
    %c0_119 = arith.constant 0 : index
    %144 = vector.load %arg18[%c0_118, %c0_119] : memref<1x32xf32, #tpu.memory_space<vmem>>, vector<1x32xf32>
    %145 = vector.broadcast %144 : vector<1x32xf32> to vector<8x32xf32>
    %146 = arith.addf %143, %145 : vector<8x32xf32>
    %cst_120 = arith.constant 0.000000e+00 : f32
    %147 = vector.broadcast %cst_120 : f32 to vector<8x32xf32>
    %148 = arith.cmpf ogt, %146, %147 : vector<8x32xf32>
    %cst_121 = arith.constant 0.000000e+00 : f32
    %149 = vector.broadcast %cst_121 : f32 to vector<8x32xf32>
    %150 = arith.minimumf %146, %149 : vector<8x32xf32>
    %151 = math.exp %150 : vector<8x32xf32>
    %cst_122 = arith.constant 1.000000e+00 : f32
    %152 = vector.broadcast %cst_122 : f32 to vector<8x32xf32>
    %153 = arith.subf %151, %152 : vector<8x32xf32>
    %154 = arith.select %148, %146, %153 : vector<8x32xi1>, vector<8x32xf32>
    %c0_123 = arith.constant 0 : index
    %c0_124 = arith.constant 0 : index
    %155 = vector.load %arg19[%c0_123, %c0_124] : memref<32x32xf32, #tpu.memory_space<vmem>>, vector<32x32xf32>
    %cst_125 = arith.constant dense<0.000000e+00> : vector<8x32xf32>
    %156 = tpu.matmul %138, %155, %cst_125 {dimension_numbers = #tpu.dot_dimension_numbers<[1], [0], [0], [1], [0, 0, 1, 1], [], []>} : vector<8x32xf32>, vector<32x32xf32>, vector<8x32xf32> -> vector<8x32xf32>
    %c0_126 = arith.constant 0 : index
    %c0_127 = arith.constant 0 : index
    %157 = vector.load %arg20[%c0_126, %c0_127] : memref<32x32xf32, #tpu.memory_space<vmem>>, vector<32x32xf32>
    %cst_128 = arith.constant dense<0.000000e+00> : vector<8x32xf32>
    %158 = tpu.matmul %154, %157, %cst_128 {dimension_numbers = #tpu.dot_dimension_numbers<[1], [0], [0], [1], [0, 0, 1, 1], [], []>} : vector<8x32xf32>, vector<32x32xf32>, vector<8x32xf32> -> vector<8x32xf32>
    %159 = arith.addf %156, %158 : vector<8x32xf32>
    %c0_129 = arith.constant 0 : index
    %c0_130 = arith.constant 0 : index
    %160 = vector.load %arg21[%c0_129, %c0_130] : memref<1x32xf32, #tpu.memory_space<vmem>>, vector<1x32xf32>
    %161 = vector.broadcast %160 : vector<1x32xf32> to vector<8x32xf32>
    %162 = arith.addf %159, %161 : vector<8x32xf32>
    %cst_131 = arith.constant 0.000000e+00 : f32
    %163 = vector.broadcast %cst_131 : f32 to vector<8x32xf32>
    %164 = arith.cmpf ogt, %162, %163 : vector<8x32xf32>
    %cst_132 = arith.constant 0.000000e+00 : f32
    %165 = vector.broadcast %cst_132 : f32 to vector<8x32xf32>
    %166 = arith.minimumf %162, %165 : vector<8x32xf32>
    %167 = math.exp %166 : vector<8x32xf32>
    %cst_133 = arith.constant 1.000000e+00 : f32
    %168 = vector.broadcast %cst_133 : f32 to vector<8x32xf32>
    %169 = arith.subf %167, %168 : vector<8x32xf32>
    %170 = arith.select %164, %162, %169 : vector<8x32xi1>, vector<8x32xf32>
    %c0_134 = arith.constant 0 : index
    %c0_135 = arith.constant 0 : index
    %171 = vector.load %arg22[%c0_134, %c0_135] : memref<32x128xf32, #tpu.memory_space<vmem>>, vector<32x128xf32>
    %cst_136 = arith.constant dense<0.000000e+00> : vector<8x128xf32>
    %172 = tpu.matmul %170, %171, %cst_136 {dimension_numbers = #tpu.dot_dimension_numbers<[1], [0], [0], [1], [0, 0, 1, 1], [], []>} : vector<8x32xf32>, vector<32x128xf32>, vector<8x128xf32> -> vector<8x128xf32>
    %c0_137 = arith.constant 0 : index
    %c0_138 = arith.constant 0 : index
    %173 = vector.load %arg3[%c0_137, %c0_138] : memref<8x1xf32, #tpu.memory_space<vmem>>, vector<8x1xf32>
    %c0_139 = arith.constant 0 : index
    %c0_140 = arith.constant 0 : index
    %174 = vector.load %arg23[%c0_139, %c0_140] : memref<1x128xf32, #tpu.memory_space<vmem>>, vector<1x128xf32>
    %175 = vector.broadcast %173 : vector<8x1xf32> to vector<8x128xf32>
    %176 = vector.broadcast %174 : vector<1x128xf32> to vector<8x128xf32>
    %177 = arith.mulf %175, %176 : vector<8x128xf32>
    %178 = arith.addf %172, %177 : vector<8x128xf32>
    %c0_141 = arith.constant 0 : index
    %c0_142 = arith.constant 0 : index
    %179 = vector.load %arg24[%c0_141, %c0_142] : memref<1x128xf32, #tpu.memory_space<vmem>>, vector<1x128xf32>
    %180 = vector.broadcast %179 : vector<1x128xf32> to vector<8x128xf32>
    %181 = arith.addf %178, %180 : vector<8x128xf32>
    %cst_143 = arith.constant 0.000000e+00 : f32
    %182 = vector.broadcast %cst_143 : f32 to vector<8x128xf32>
    %183 = arith.cmpf ogt, %181, %182 : vector<8x128xf32>
    %cst_144 = arith.constant 2.000000e-02 : f32
    %184 = vector.broadcast %cst_144 : f32 to vector<8x128xf32>
    %185 = arith.mulf %184, %181 : vector<8x128xf32>
    %186 = arith.select %183, %181, %185 : vector<8x128xi1>, vector<8x128xf32>
    %c0_145 = arith.constant 0 : index
    %c0_146 = arith.constant 0 : index
    %187 = vector.load %arg25[%c0_145, %c0_146] : memref<128x64xf32, #tpu.memory_space<vmem>>, vector<128x64xf32>
    %cst_147 = arith.constant dense<0.000000e+00> : vector<8x64xf32>
    %188 = tpu.matmul %186, %187, %cst_147 {dimension_numbers = #tpu.dot_dimension_numbers<[1], [0], [0], [1], [0, 0, 1, 1], [], []>} : vector<8x128xf32>, vector<128x64xf32>, vector<8x64xf32> -> vector<8x64xf32>
    %c0_148 = arith.constant 0 : index
    %c0_149 = arith.constant 0 : index
    %189 = vector.load %arg26[%c0_148, %c0_149] : memref<1x64xf32, #tpu.memory_space<vmem>>, vector<1x64xf32>
    %190 = vector.broadcast %189 : vector<1x64xf32> to vector<8x64xf32>
    %191 = arith.addf %188, %190 : vector<8x64xf32>
    %cst_150 = arith.constant 0.000000e+00 : f32
    %192 = vector.broadcast %cst_150 : f32 to vector<8x64xf32>
    %193 = arith.cmpf ogt, %191, %192 : vector<8x64xf32>
    %cst_151 = arith.constant 2.000000e-02 : f32
    %194 = vector.broadcast %cst_151 : f32 to vector<8x64xf32>
    %195 = arith.mulf %194, %191 : vector<8x64xf32>
    %196 = arith.select %193, %191, %195 : vector<8x64xi1>, vector<8x64xf32>
    %c0_152 = arith.constant 0 : index
    %c0_153 = arith.constant 0 : index
    %197 = vector.load %arg27[%c0_152, %c0_153] : memref<64x128xf32, #tpu.memory_space<vmem>>, vector<64x128xf32>
    %cst_154 = arith.constant dense<0.000000e+00> : vector<8x128xf32>
    %198 = tpu.matmul %196, %197, %cst_154 {dimension_numbers = #tpu.dot_dimension_numbers<[1], [0], [0], [1], [0, 0, 1, 1], [], []>} : vector<8x64xf32>, vector<64x128xf32>, vector<8x128xf32> -> vector<8x128xf32>
    %c0_155 = arith.constant 0 : index
    %c0_156 = arith.constant 0 : index
    %199 = vector.load %arg28[%c0_155, %c0_156] : memref<1x128xf32, #tpu.memory_space<vmem>>, vector<1x128xf32>
    %200 = vector.broadcast %199 : vector<1x128xf32> to vector<8x128xf32>
    %201 = arith.addf %198, %200 : vector<8x128xf32>
    %c0_157 = arith.constant 0 : index
    %c0_158 = arith.constant 0 : index
    %202 = vector.load %arg29[%c0_157, %c0_158] : memref<8x128xf32, #tpu.memory_space<vmem>>, vector<8x128xf32>
    tpu.vector_store %arg29[%c0_157, %c0_158], %201 {strides = array<i32>} : memref<8x128xf32, #tpu.memory_space<vmem>>, vector<8x128xf32>,
    return
  }
}

</mosaic_0001>

<bundles_post_ra>
// kernel: generator_forward.1
= control target key start
LH: loop header
LB: loop body
LE: loop exit
PB: predicated region body
PF: predicated region fallthrough
CT: control target
= control target key end

     0   :  { %v2314_v0 = vmov 0.0   ;;  %s2315_s3 = smov 4   ;;  %vm196_vm0 = vcmask 179200   ;;  %s2316_s10 = smov 6   ;;  %vm269_vm1 = vcmask 1045504   ;;  %vm835_vm2 = vcmask 261120   ;;  %s2888_s0 = inlined_call_operand.smem [shape: u32[30], index: -1, kind: input, shape index: {}] }
   0x1   :  { %273 = vmatprep.subr.mxu0 %v2314_v0  ;;  %s2358_s6 = sld [smem:[%s2888_s0 + %s2315_s3]]   ;;  %s2317_s14 = smov 5   ;;  %vm841_vm3 = vcmask 523520   ;;  %vm847_vm4 = vcmask 785920   ;;  %vm853_vm5 = vcmask 1048320   ;;  %vm1001_vm6 = vcmask 1040384  }
   0x2   :  { %s2363_s9 = sld [smem:[%s2888_s0]]   ;;  %s2318_s18 = smov 7   ;;  %vm2324_vm7 = vmmov 0   ;;  %vm997_vm8 = vcmask 400384   ;;  %vm1095_vm9 = vcmask 1042432   ;;  %vm1091_vm10 = vcmask 482304  }
   0x3   :  { %s2386_s13 = sld [smem:[%s2888_s0 + %s2316_s10]]   ;;  %s2319_s22 = smov 8   ;;  %vm1182_vm11 = vcmask 195584  }
   0x4   :  { %s1835_s17 = sld [smem:[%s2888_s0 + %s2317_s14]]   ;;  %s2320_s26 = smov 32  }
   0x5   :  { %s1837_s21 = sld [smem:[%s2888_s0 + %s2318_s18]]   ;;  %s2321_s27 = smov 64  }
   0x6   :  { %s2629_s25 = sld [smem:[%s2888_s0 + %s2319_s22]]   ;;  %s2322_s28 = smov 96  }
   0x7   :  { %v185_v1 = vld [vmem:[%s2358_s6 + $0x78] sm:$0xff]  ;;  %v184_v2 = vld [vmem:[%s2358_s6 + $0x70] sm:$0xff]  ;;  %v183_v3 = vld [vmem:[%s2358_s6 + $0x68] sm:$0xff]  ;;  %s2323_s29 = smov 10   ;;  %s2325_s3 = smov 9  }
   0x8   :  { %274 = vmatpush1.msra.mxu0 %v185_v1  ;;  %v182_v4 = vld [vmem:[%s2358_s6 + $0x60] sm:$0xff]  ;;  %v181_v5 = vld [vmem:[%s2358_s6 + $0x58] sm:$0xff]  ;;  %v123_v6 = vld [vmem:[%s2363_s9 + $0x8] sm:$0xff]  ;;  %s1840_s2 = sld [smem:[%s2888_s0 + %s2323_s29]]   ;;  %s2326_s7 = smov 12  }
   0x9   :  { %275 = vmatprep.subr.mxu0 %v2314_v0  ;;  %1862 = vmatprep.mubr.msk.f32.mxu0 %vm196_vm0, %v123_v6  ;;  %v180_v7 = vld [vmem:[%s2358_s6 + $0x50] sm:$0xff]  ;;  %v179_v8 = vld [vmem:[%s2358_s6 + $0x48] sm:$0xff]  ;;  %v178_v9 = vld [vmem:[%s2358_s6 + $0x40] sm:$0xff]  ;;  %s2714_s10 = sld [smem:[%s2888_s0 + %s2326_s7]]   ;;  %s2327_s11 = smov 1  }
   0xa   :  { %276 = vmatpush1.msra.mxu0 %v184_v2  ;;  %v177_v10 = vld [vmem:[%s2358_s6 + $0x38] sm:$0xff]  ;;  %v176_v11 = vld [vmem:[%s2358_s6 + $0x30] sm:$0xff]  ;;  %v175_v12 = vld [vmem:[%s2358_s6 + $0x28] sm:$0xff]  ;;  %s1831_s14 = sld [smem:[%s2888_s0 + %s2327_s11]]   ;;  %s2328_s15 = smov 15  }
   0xb   :  { %277 = vmatprep.subr.mxu0 %v2314_v0  ;;  %v174_v13 = vld [vmem:[%s2358_s6 + $0x20] sm:$0xff]  ;;  %v173_v14 = vld [vmem:[%s2358_s6 + $0x18] sm:$0xff]  ;;  %v576_v17 = vld [vmem:[%s2386_s13 + $0xf0] sm:$0xff]  ;;  %s1845_s18 = sld [smem:[%s2888_s0 + %s2328_s15]]   ;;  %s2330_s19 = smov 2  }
   0xc   :  { %278 = vmatpush1.msra.mxu0 %v183_v3  ;;  %v577_v15 = vld [vmem:[%s2386_s13 + $0xf8] sm:$0xff]  ;;  %v560_v18 = vld [vmem:[%s2386_s13 + $0x70] sm:$0xff]  ;;  %v575_v20 = vld [vmem:[%s2386_s13 + $0xe8] sm:$0xff]  ;;  %s1832_s22 = sld [smem:[%s2888_s0 + %s2330_s19]]   ;;  %s2331_s23 = smov 19  }
   0xd   :  { %279 = vmatprep.subr.mxu0 %v2314_v0  ;;  %v561_v16 = vld [vmem:[%s2386_s13 + $0x78] sm:$0xff]  ;;  %1912 = vmatprep.subr.mxu1 %v577_v15  ;;  %v172_v19 = vld [vmem:[%s2358_s6 + $0x10] sm:$0xff]  ;;  %v559_v21 = vld [vmem:[%s2386_s13 + $0x68] sm:$0xff]  ;;  %s2333_s1 = smov 14   ;;  %s2334_s5 = smov 13  }
   0xe   :  { %280 = vmatpush1.msra.mxu0 %v182_v4  ;;  %1913 = vmatpush3.msra.mxu1 %v561_v16  ;;  %v171_v22 = vld [vmem:[%s2358_s6 + $0x8] sm:$0xff]  ;;  %v574_v23 = vld [vmem:[%s2386_s13 + $0xe0] sm:$0xff]  ;;  %v573_v26 = vld [vmem:[%s2386_s13 + $0xd8] sm:$0xff]  ;;  %s1844_s4 = sld [smem:[%s2888_s0 + %s2333_s1]]   ;;  %s2340_s29 = smov 3  }
   0xf   :  { %281 = vmatprep.subr.mxu0 %v2314_v0  ;;  %1914 = vmatprep.subr.mxu1 %v576_v17  ;;  %v558_v24 = vld [vmem:[%s2386_s13 + $0x60] sm:$0xff]  ;;  %v557_v27 = vld [vmem:[%s2386_s13 + $0x58] sm:$0xff]  ;;  %v188_v28 = vld [vmem:[%s2358_s6 + $0x90] sm:$0x3f]  ;;  %s1843_s8 = sld [smem:[%s2888_s0 + %s2334_s5]]   ;;  %s2342_s7 = smov 21  }
  0x10   :  { %282 = vmatpush1.msra.mxu0 %v181_v5  ;;  %1915 = vmatpush3.msra.mxu1 %v560_v18  ;;  %v170_v25 = vld [vmem:[%s2358_s6] sm:$0xff]  ;;  %v572_v29 = vld [vmem:[%s2386_s13 + $0xd0] sm:$0xff]  ;;  %v187_v31 = vld [vmem:[%s2358_s6 + $0x88] sm:$0xff]  ;;  %s2343_s11 = smov 27   ;;  %s2344_s15 = smov 23  }
  0x11   :  { %283 = vmatprep.subr.mxu0 %v2314_v0  ;;  %1916 = vmatprep.subr.mxu1 %v575_v20  ;;  %v556_v30 = vld [vmem:[%s2386_s13 + $0x50] sm:$0xff]  ;;  %v571_v32 = vld [vmem:[%s2386_s13 + $0xc8] sm:$0xff]  ;;  %v186_v34 = vld [vmem:[%s2358_s6 + $0x80] sm:$0xff]  ;;  %s1839_s6 = sld [smem:[%s2888_s0 + %s2325_s3]]   ;;  %s2341_s3 = smov 25  }
  0x12   :  { %284 = vmatpush1.msra.mxu0 %v180_v7  ;;  %1917 = vmatpush3.msra.mxu1 %v559_v21  ;;  %v555_v33 = vld [vmem:[%s2386_s13 + $0x48] sm:$0xff]  ;;  %v570_v35 = vld [vmem:[%s2386_s13 + $0xc0] sm:$0xff]  ;;  %v125_v38 = vld [vmem:[%s2363_s9 + $0x18] sm:$0xff]  ;;  %s2345_s19 = smov 24   ;;  %s2348_s1 = smov 29  }
  0x13   :  { %285 = vmatprep.subr.mxu0 %v2314_v0  ;;  %1918 = vmatprep.subr.mxu1 %v574_v23  ;;  %v122_v36 = vld [vmem:[%s2363_s9] sm:$0xff]  ;;  %v569_v39 = vld [vmem:[%s2386_s13 + $0xb8] sm:$0xff]  ;;  %v124_v41 = vld [vmem:[%s2363_s9 + $0x10] sm:$0xff] }
  0x14   :  { %286 = vmatpush1.msra.mxu0 %v179_v8  ;;  %1919 = vmatpush3.msra.mxu1 %v558_v24  ;;  %v554_v37 = vld [vmem:[%s2386_s13 + $0x40] sm:$0xff]  ;;  %v553_v40 = vld [vmem:[%s2386_s13 + $0x38] sm:$0xff]  ;;  %v127_v42 = vld [vmem:[%s2363_s9 + $0x28] sm:$0xff] }
  0x15   :  { %287 = vmatprep.subr.mxu0 %v2314_v0  ;;  %1920 = vmatprep.subr.mxu1 %v573_v26  ;;  %v126_v43 = vld [vmem:[%s2363_s9 + $0x20] sm:$0xff]  ;;  %v129_v44 = vld [vmem:[%s2363_s9 + $0x38] sm:$0xff]  ;;  %v128_v45 = vld [vmem:[%s2363_s9 + $0x30] sm:$0xff] }
  0x16   :  { %288 = vmatpush1.msra.mxu0 %v178_v9  ;;  %1921 = vmatpush3.msra.mxu1 %v557_v27  ;;  %v131_v46 = vld [vmem:[%s2363_s9 + $0x48] sm:$0xff]  ;;  %v130_v47 = vld [vmem:[%s2363_s9 + $0x40] sm:$0xff]  ;;  %v133_v48 = vld [vmem:[%s2363_s9 + $0x58] sm:$0xff] }
  0x17   :  { %289 = vmatprep.subr.mxu0 %v2314_v0  ;;  %1922 = vmatprep.subr.mxu1 %v572_v29  ;;  %v132_v49 = vld [vmem:[%s2363_s9 + $0x50] sm:$0xff]  ;;  %v135_v50 = vld [vmem:[%s2363_s9 + $0x68] sm:$0xff]  ;;  %v134_v51 = vld [vmem:[%s2363_s9 + $0x60] sm:$0xff] }
  0x18   :  { %290 = vmatpush1.msra.mxu0 %v177_v10  ;;  %1923 = vmatpush3.msra.mxu1 %v556_v30  ;;  %v137_v52 = vld [vmem:[%s2363_s9 + $0x78] sm:$0xff]  ;;  %v136_v53 = vld [vmem:[%s2363_s9 + $0x70] sm:$0xff]  ;;  %v139_v54 = vld [vmem:[%s2363_s9 + $0x88] sm:$0xff] }
  0x19   :  { %291 = vmatprep.subr.mxu0 %v2314_v0  ;;  %1924 = vmatprep.subr.mxu1 %v571_v32  ;;  %v138_v55 = vld [vmem:[%s2363_s9 + $0x80] sm:$0xff]  ;;  %v141_v56 = vld [vmem:[%s2363_s9 + $0x98] sm:$0xff]  ;;  %v140_v57 = vld [vmem:[%s2363_s9 + $0x90] sm:$0xff] }
  0x1a   :  { %292 = vmatpush1.msra.mxu0 %v176_v11  ;;  %1925 = vmatpush3.msra.mxu1 %v555_v33  ;;  %v143_v58 = vld [vmem:[%s2363_s9 + $0xa8] sm:$0xff]  ;;  %v142_v59 = vld [vmem:[%s2363_s9 + $0xa0] sm:$0xff]  ;;  %v145_v60 = vld [vmem:[%s2363_s9 + $0xb8] sm:$0xff] }
  0x1b   :  { %293 = vmatprep.subr.mxu0 %v2314_v0  ;;  %1926 = vmatprep.subr.mxu1 %v570_v35  ;;  %v144_v61 = vld [vmem:[%s2363_s9 + $0xb0] sm:$0xff]  ;;  %v147_v62 = vld [vmem:[%s2363_s9 + $0xc8] sm:$0xff]  ;;  %v146_v63 = vld [vmem:[%s2363_s9 + $0xc0] sm:$0xff] }
  0x1c   :  { %294 = vmatpush1.msra.mxu0 %v175_v12  ;;  %1927 = vmatpush3.msra.mxu1 %v554_v37  ;;  %v149_v1 = vld [vmem:[%s2363_s9 + $0xd8] sm:$0xff]  ;;  %v148_v2 = vld [vmem:[%s2363_s9 + $0xd0] sm:$0xff]  ;;  %v151_v3 = vld [vmem:[%s2363_s9 + $0xe8] sm:$0xff] }
  0x1d   :  { %295 = vmatprep.subr.mxu0 %v2314_v0  ;;  %1928 = vmatprep.subr.mxu1 %v569_v39  ;;  %v150_v4 = vld [vmem:[%s2363_s9 + $0xe0] sm:$0xff]  ;;  %v153_v5 = vld [vmem:[%s2363_s9 + $0xf8] sm:$0xff]  ;;  %v152_v6 = vld [vmem:[%s2363_s9 + $0xf0] sm:$0xff] }
  0x1e   :  { %296 = vmatpush1.msra.mxu0 %v174_v13  ;;  %1929 = vmatpush3.msra.mxu1 %v553_v40  ;;  %v155_v7 = vld [vmem:[%s2363_s9 + $0x108] sm:$0xff]  ;;  %v154_v8 = vld [vmem:[%s2363_s9 + $0x100] sm:$0xff]  ;;  %v157_v9 = vld [vmem:[%s2363_s9 + $0x118] sm:$0xff] }
  0x1f   :  { %297 = vmatprep.subr.mxu0 %v2314_v0  ;;  %v568_v10 = vld [vmem:[%s2386_s13 + $0xb0] sm:$0xff]  ;;  %v567_v13 = vld [vmem:[%s2386_s13 + $0xa8] sm:$0xff]  ;;  %v566_v16 = vld [vmem:[%s2386_s13 + $0xa0] sm:$0xff] }
  0x20   :  { %298 = vmatpush1.msra.mxu0 %v173_v14  ;;  %1930 = vmatprep.subr.mxu1 %v568_v10  ;;  %v552_v11 = vld [vmem:[%s2386_s13 + $0x30] sm:$0xff]  ;;  %v159_v14 = vld [vmem:[%s2363_s9 + $0x128] sm:$0xff]  ;;  %v550_v17 = vld [vmem:[%s2386_s13 + $0x20] sm:$0xff] }
  0x21   :  { %299 = vmatprep.subr.mxu0 %v2314_v0  ;;  %v156_v12 = vld [vmem:[%s2363_s9 + $0x110] sm:$0xff]  ;;  %1931 = vmatpush3.msra.mxu1 %v552_v11  ;;  %v551_v15 = vld [vmem:[%s2386_s13 + $0x28] sm:$0xff]  ;;  %v158_v18 = vld [vmem:[%s2363_s9 + $0x120] sm:$0xff] }
  0x22   :  { %300 = vmatpush1.msra.mxu0 %v172_v19  ;;  %1932 = vmatprep.subr.mxu1 %v567_v13  ;;  %v565_v19 = vld [vmem:[%s2386_s13 + $0x98] sm:$0xff]  ;;  %v548_v23 = vld [vmem:[%s2386_s13 + $0x10] sm:$0xff]  ;;  %v163_v26 = vld [vmem:[%s2363_s9 + $0x148] sm:$0xff] }
  0x23   :  { %301 = vmatprep.subr.mxu0 %v2314_v0  ;;  %1933 = vmatpush3.msra.mxu1 %v551_v15  ;;  %v161_v20 = vld [vmem:[%s2363_s9 + $0x138] sm:$0xff]  ;;  %v160_v24 = vld [vmem:[%s2363_s9 + $0x130] sm:$0xff]  ;;  %v547_v27 = vld [vmem:[%s2386_s13 + $0x8] sm:$0xff] }
  0x24   :  { %302 = vmatpush1.msra.mxu0 %v171_v22  ;;  %1934 = vmatprep.subr.mxu1 %v566_v16  ;;  %v549_v21 = vld [vmem:[%s2386_s13 + $0x18] sm:$0xff]  ;;  %v564_v22 = vld [vmem:[%s2386_s13 + $0x90] sm:$0xff]  ;;  %v546_v29 = vld [vmem:[%s2386_s13] sm:$0xff] }
  0x25   :  { %303 = vmatprep.subr.mxu0 %v2314_v0  ;;  %1935 = vmatpush3.msra.mxu1 %v550_v17  ;;  %v162_v30 = vld [vmem:[%s2363_s9 + $0x140] sm:$0xff]  ;;  %v164_v32 = vld [vmem:[%s2363_s9 + $0x150] sm:$0xff]  ;;  %v167_v33 = vld [vmem:[%s2363_s9 + $0x168] sm:$0xff] }
  0x26   :  { %304 = vmatpush1.msra.mxu0 %v170_v25  ;;  %1936 = vmatprep.subr.mxu1 %v565_v19  ;;  %v563_v25 = vld [vmem:[%s2386_s13 + $0x88] sm:$0xff]  ;;  %v169_v35 = vld [vmem:[%s2363_s9 + $0x178] sm:$0xff]  ;;  %v600_v10 = vld [vmem:[%s2386_s13 + $0x1b0] sm:$0xff] }
  0x27   :  { %331 = vmatprep.subr.mxu0 %v2314_v0  ;;  %1937 = vmatpush3.msra.mxu1 %v549_v21  ;;  %v609_v37 = vld [vmem:[%s2386_s13 + $0x1f8] sm:$0xff]  ;;  %v599_v13 = vld [vmem:[%s2386_s13 + $0x1a8] sm:$0xff] }
  0x28   :  { %1861 = vmatpush2.msk.msra.mxu0 %vm269_vm1, %v188_v28  ;;  %1938 = vmatprep.subr.mxu1 %v564_v22  ;;  %v562_v28 = vld [vmem:[%s2386_s13 + $0x80] sm:$0xff]  ;;  %v583_v16 = vld [vmem:[%s2386_s13 + $0x128] sm:$0xff]  ;;  %v597_v22 = vld [vmem:[%s2386_s13 + $0x198] sm:$0xff] }
  0x29   :  { %333 = vmatprep.subr.mxu0 %v2314_v0  ;;  %1939 = vmatpush3.msra.mxu1 %v548_v23 }
  0x2a   :  { %334 = vmatpush2.msra.mxu0 %v187_v31  ;;  %1940 = vmatprep.subr.mxu1 %v563_v25  ;;  %v165_v31 = vld [vmem:[%s2363_s9 + $0x158] sm:$0xff] }
  0x2b   :  { %335 = vmatprep.subr.mxu0 %v2314_v0  ;;  %1941 = vmatpush3.msra.mxu1 %v547_v27  ;;  %v581_v25 = vld [vmem:[%s2386_s13 + $0x118] sm:$0xff] }
  0x2c   :  { %336 = vmatpush2.msra.mxu0 %v186_v34  ;;  %1942 = vmatprep.subr.mxu1 %v562_v28  ;;  %v166_v34 = vld [vmem:[%s2363_s9 + $0x160] sm:$0xff]  ;;  %v580_v28 = vld [vmem:[%s2386_s13 + $0x110] sm:$0xff] }
  0x2d   :  { %338 = vmatmul.mubr.f32.vlgmr.msra.gmra.mxu0 %v122_v36  ;;  %2193 = vmatprep.subr.mxu0 %v2314_v0  ;;  %v168_v36 = vld [vmem:[%s2363_s9 + $0x170] sm:$0xff]  ;;  %s2335_s9 = smov 17  }
  0x2e   :  { %1863 = vmatprep.mubr.msk.f32.mxu0 %vm196_vm0, %v125_v38  ;;  %1943 = vmatpush3.msra.mxu1 %v546_v29  ;;  %v2516_v38 = vld [vmem:[%s1835_s17] ss:$0 sm:$0xff]  ;;  %v595_v29 = vld [vmem:[%s2386_s13 + $0x188] sm:$0xff]  ;;  %s1847_s12 = sld [smem:[%s2888_s0 + %s2335_s9]]   ;;  %s2337_s17 = smov 20  }
  0x2f   :  { %1968 = vmatprep.subr.mxu1 %v609_v37  ;;  %s1850_s20 = sld [smem:[%s2888_s0 + %s2337_s17]]  }
  0x31   :  { %343 = vmatmul.mubr.f32.gmra.mxu0 %v124_v41 }
  0x32   :  { %1864 = vmatprep.mubr.msk.f32.mxu0 %vm196_vm0, %v127_v42 }
  0x35   :  { %348 = vmatmul.mubr.f32.gmra.mxu0 %v126_v43 }
  0x36   :  { %1865 = vmatprep.mubr.msk.f32.mxu0 %vm196_vm0, %v129_v44  ;;  %v593_v44 = vld [vmem:[%s2386_s13 + $0x178] sm:$0xff] }
  0x39   :  { %353 = vmatmul.mubr.f32.gmra.mxu0 %v128_v45  ;;  %v608_v45 = vld [vmem:[%s2386_s13 + $0x1f0] sm:$0xff] }
  0x3a   :  { %1866 = vmatprep.mubr.msk.f32.mxu0 %vm196_vm0, %v131_v46 }
  0x3d   :  { %358 = vmatmul.mubr.f32.gmra.mxu0 %v130_v47  ;;  %v592_v47 = vld [vmem:[%s2386_s13 + $0x170] sm:$0xff] }
  0x3e   :  { %1867 = vmatprep.mubr.msk.f32.mxu0 %vm196_vm0, %v133_v48  ;;  %v607_v48 = vld [vmem:[%s2386_s13 + $0x1e8] sm:$0xff] }
  0x41   :  { %363 = vmatmul.mubr.f32.gmra.mxu0 %v132_v49 }
  0x42   :  { %1868 = vmatprep.mubr.msk.f32.mxu0 %vm196_vm0, %v135_v50  ;;  %v591_v50 = vld [vmem:[%s2386_s13 + $0x168] sm:$0xff] }
  0x45   :  { %368 = vmatmul.mubr.f32.gmra.mxu0 %v134_v51  ;;  %v606_v51 = vld [vmem:[%s2386_s13 + $0x1e0] sm:$0xff] }
  0x46   :  { %1869 = vmatprep.mubr.msk.f32.mxu0 %vm196_vm0, %v137_v52 }
  0x49   :  { %373 = vmatmul.mubr.f32.gmra.mxu0 %v136_v53  ;;  %v590_v53 = vld [vmem:[%s2386_s13 + $0x160] sm:$0xff] }
  0x4a   :  { %1870 = vmatprep.mubr.msk.f32.mxu0 %vm196_vm0, %v139_v54  ;;  %v605_v54 = vld [vmem:[%s2386_s13 + $0x1d8] sm:$0xff] }
  0x4d   :  { %378 = vmatmul.mubr.f32.gmra.mxu0 %v138_v55 }
  0x4e   :  { %1871 = vmatprep.mubr.msk.f32.mxu0 %vm196_vm0, %v141_v56 }
  0x51   :  { %383 = vmatmul.mubr.f32.gmra.mxu0 %v140_v57  ;;  %v589_v57 = vld [vmem:[%s2386_s13 + $0x158] sm:$0xff] }
  0x52   :  { %1872 = vmatprep.mubr.msk.f32.mxu0 %vm196_vm0, %v143_v58 }
  0x55   :  { %388 = vmatmul.mubr.f32.gmra.mxu0 %v142_v59  ;;  %v604_v59 = vld [vmem:[%s2386_s13 + $0x1d0] sm:$0xff] }
  0x56   :  { %1873 = vmatprep.mubr.msk.f32.mxu0 %vm196_vm0, %v145_v60 }
  0x59   :  { %393 = vmatmul.mubr.f32.gmra.mxu0 %v144_v61  ;;  %v588_v61 = vld [vmem:[%s2386_s13 + $0x150] sm:$0xff] }
  0x5a   :  { %1874 = vmatprep.mubr.msk.f32.mxu0 %vm196_vm0, %v147_v62 }
  0x5d   :  { %398 = vmatmul.mubr.f32.gmra.mxu0 %v146_v63  ;;  %v603_v63 = vld [vmem:[%s2386_s13 + $0x1c8] sm:$0xff] }
  0x5e   :  { %1875 = vmatprep.mubr.msk.f32.mxu0 %vm196_vm0, %v149_v1 }
  0x61   :  { %403 = vmatmul.mubr.f32.gmra.mxu0 %v148_v2 }
  0x62   :  { %1876 = vmatprep.mubr.msk.f32.mxu0 %vm196_vm0, %v151_v3  ;;  %v587_v3 = vld [vmem:[%s2386_s13 + $0x148] sm:$0xff] }
  0x65   :  { %408 = vmatmul.mubr.f32.gmra.mxu0 %v150_v4  ;;  %v602_v4 = vld [vmem:[%s2386_s13 + $0x1c0] sm:$0xff] }
  0x66   :  { %1877 = vmatprep.mubr.msk.f32.mxu0 %vm196_vm0, %v153_v5 }
  0x69   :  { %413 = vmatmul.mubr.f32.gmra.mxu0 %v152_v6  ;;  %v586_v6 = vld [vmem:[%s2386_s13 + $0x140] sm:$0xff] }
  0x6a   :  { %1878 = vmatprep.mubr.msk.f32.mxu0 %vm196_vm0, %v155_v7  ;;  %v601_v7 = vld [vmem:[%s2386_s13 + $0x1b8] sm:$0xff] }
  0x6d   :  { %418 = vmatmul.mubr.f32.gmra.mxu0 %v154_v8 }
  0x6e   :  { %1879 = vmatprep.mubr.msk.f32.mxu0 %vm196_vm0, %v157_v9  ;;  %v585_v9 = vld [vmem:[%s2386_s13 + $0x138] sm:$0xff] }
  0x71   :  { %423 = vmatmul.mubr.f32.gmra.mxu0 %v156_v12  ;;  %v584_v12 = vld [vmem:[%s2386_s13 + $0x130] sm:$0xff] }
  0x72   :  { %1880 = vmatprep.mubr.msk.f32.mxu0 %vm196_vm0, %v159_v14 }
  0x75   :  { %428 = vmatmul.mubr.f32.gmra.mxu0 %v158_v18  ;;  %v598_v18 = vld [vmem:[%s2386_s13 + $0x1a0] sm:$0xff] }
  0x76   :  { %1881 = vmatprep.mubr.msk.f32.mxu0 %vm196_vm0, %v161_v20  ;;  %v582_v20 = vld [vmem:[%s2386_s13 + $0x120] sm:$0xff] }
  0x79   :  { %433 = vmatmul.mubr.f32.gmra.mxu0 %v160_v24 }
  0x7a   :  { %1882 = vmatprep.mubr.msk.f32.mxu0 %vm196_vm0, %v163_v26  ;;  %v596_v26 = vld [vmem:[%s2386_s13 + $0x190] sm:$0xff] }
  0x7d   :  { %438 = vmatmul.mubr.f32.gmra.mxu0 %v162_v30 }
  0x7e   :  { %1883 = vmatprep.mubr.msk.f32.mxu0 %vm196_vm0, %v165_v31  ;;  %v579_v31 = vld [vmem:[%s2386_s13 + $0x108] sm:$0xff] }
  0x81   :  { %443 = vmatmul.mubr.f32.gmra.mxu0 %v164_v32  ;;  %v594_v32 = vld [vmem:[%s2386_s13 + $0x180] sm:$0xff] }
  0x82   :  { %1884 = vmatprep.mubr.msk.f32.mxu0 %vm196_vm0, %v167_v33 }
  0x85   :  { %448 = vmatmul.mubr.f32.gmra.mxu0 %v166_v34  ;;  %v578_v34 = vld [vmem:[%s2386_s13 + $0x100] sm:$0xff]  ;;  %s2336_s13 = smov 18  }
  0x86   :  { %1885 = vmatprep.mubr.msk.f32.mxu0 %vm196_vm0, %v169_v35  ;;  %s1848_s16 = sld [smem:[%s2888_s0 + %s2336_s13]]  }
  0x89   :  { %453 = vmatmul.mubr.f32.gmra.mxu0 %v168_v36 }
  0x8a   :  { %2201 = vmatprep.mubr.msk.f32.mxu0 %vm2324_vm7, %v2314_v0 }
  0xed   :  { %v339_v39 = vpop.f32.mrf.mxu0 }
  0xee   :  { %v340_v40 = vadd.f32 %v2516_v38, %v339_v39 }
  0xef   :  { %v341_v41 = vpop.f32.mrf.mxu0 }
  0xf0   :  { %v458_v42 = vmax.f32 %v340_v40, 0.0 }
  0xf1   :  { %v2519_v43 = vpop.f32.mrf.mxu0 }
  0xf2   :  { %681 = vmatprep.mubr.f32.mxu1 %v458_v42 }
  0xf3   :  { %v346_v46 = vpop.f32.mrf.mxu0  ;;  %682 = vmatmul.mubr.f32.vlgmr.msra.gmra.mxu1 %v2314_v0 }
  0xf4   :  { %1969 = vmatpush3.msra.mxu1 %v593_v44 }
  0xf5   :  { %v349_v49 = vpop.f32.mrf.mxu0  ;;  %1970 = vmatprep.subr.mxu1 %v608_v45 }
  0xf6   :  { %1971 = vmatpush3.msra.mxu1 %v592_v47  ;;  %v2531_v55 = vadd.f32 %v2516_v38, %v349_v49 }
  0xf7   :  { %v351_v52 = vpop.f32.mrf.mxu0  ;;  %1972 = vmatprep.subr.mxu1 %v607_v48 }
  0xf8   :  { %1973 = vmatpush3.msra.mxu1 %v591_v50  ;;  %v460_v1 = vmax.f32 %v2531_v55, 0.0 }
  0xf9   :  { %v354_v56 = vpop.f32.mrf.mxu0  ;;  %1974 = vmatprep.subr.mxu1 %v606_v51 }
  0xfa   :  { %v355_v58 = vadd.f32 %v2516_v38, %v354_v56  ;;  %1975 = vmatpush3.msra.mxu1 %v590_v53 }
  0xfb   :  { %v356_v60 = vpop.f32.mrf.mxu0  ;;  %1976 = vmatprep.subr.mxu1 %v605_v54 }
  0xfc   :  { %v461_v62 = vmax.f32 %v355_v58, 0.0  ;;  %1977 = vmatpush3.msra.mxu1 %v589_v57 }
  0xfd   :  { %v2539_v2 = vpop.f32.mrf.mxu0  ;;  %1978 = vmatprep.subr.mxu1 %v604_v59 }
  0xfe   :  { %686 = vmatprep.mubr.f32.mxu1 %v461_v62  ;;  %1979 = vmatpush3.msra.mxu1 %v588_v61 }
  0xff   :  { %v361_v5 = vpop.f32.mrf.mxu0  ;;  %687 = vmatmul.mubr.f32.gmra.mxu1 %v460_v1  ;;  %1980 = vmatprep.subr.mxu1 %v603_v63 }
 0x100   :  { %1981 = vmatpush3.msra.mxu1 %v587_v3 }
 0x101   :  { %v364_v8 = vpop.f32.mrf.mxu0  ;;  %1982 = vmatprep.subr.mxu1 %v602_v4 }
 0x102   :  { %1983 = vmatpush3.msra.mxu1 %v586_v6  ;;  %v2552_v14 = vadd.f32 %v2516_v38, %v364_v8 }
 0x103   :  { %v366_v11 = vpop.f32.mrf.mxu0  ;;  %1984 = vmatprep.subr.mxu1 %v601_v7 }
 0x104   :  { %1985 = vmatpush3.msra.mxu1 %v585_v9  ;;  %v463_v23 = vmax.f32 %v2552_v14, 0.0 }
 0x105   :  { %v369_v15 = vpop.f32.mrf.mxu0  ;;  %1986 = vmatprep.subr.mxu1 %v600_v10 }
 0x106   :  { %v370_v17 = vadd.f32 %v2516_v38, %v369_v15  ;;  %1987 = vmatpush3.msra.mxu1 %v584_v12 }
 0x107   :  { %v371_v19 = vpop.f32.mrf.mxu0  ;;  %1988 = vmatprep.subr.mxu1 %v599_v13 }
 0x108   :  { %v464_v21 = vmax.f32 %v370_v17, 0.0  ;;  %1989 = vmatpush3.msra.mxu1 %v583_v16 }
 0x109   :  { %v2560_v24 = vpop.f32.mrf.mxu0  ;;  %1990 = vmatprep.subr.mxu1 %v598_v18 }
 0x10a   :  { %691 = vmatprep.mubr.f32.mxu1 %v464_v21  ;;  %1991 = vmatpush3.msra.mxu1 %v582_v20 }
 0x10b   :  { %v376_v27 = vpop.f32.mrf.mxu0  ;;  %692 = vmatmul.mubr.f32.gmra.mxu1 %v463_v23  ;;  %1992 = vmatprep.subr.mxu1 %v597_v22 }
 0x10c   :  { %1993 = vmatpush3.msra.mxu1 %v581_v25  ;;  %v345_v25 = vadd.f32 %v2516_v38, %v2519_v43  ;;  %v375_v43 = vadd.f32 %v2516_v38, %v2560_v24 }
 0x10d   :  { %v379_v30 = vpop.f32.mrf.mxu0  ;;  %1994 = vmatprep.subr.mxu1 %v596_v26 }
 0x10e   :  { %1995 = vmatpush3.msra.mxu1 %v580_v28  ;;  %v2572_v35 = vadd.f32 %v2516_v38, %v379_v30  ;;  %v360_v30 = vadd.f32 %v2516_v38, %v2539_v2  ;;  %v465_v55 = vmax.f32 %v375_v43, 0.0  ;;  %v882_v43 = vld [vmem:[%s2629_s25 + $0x48] sm:$0xff] }
 0x10f   :  { %v381_v33 = vpop.f32.mrf.mxu0  ;;  %1996 = vmatprep.subr.mxu1 %v595_v29  ;;  %v459_v29 = vmax.f32 %v345_v25, 0.0 }
 0x110   :  { %1997 = vmatpush3.msra.mxu1 %v579_v31  ;;  %v466_v41 = vmax.f32 %v2572_v35, 0.0  ;;  %v462_v33 = vmax.f32 %v360_v30, 0.0  ;;  %v898_v30 = vld [vmem:[%s2629_s25 + $0xc8] sm:$0xff] }
 0x111   :  { %v384_v36 = vpop.f32.mrf.mxu0  ;;  %1998 = vmatprep.subr.mxu1 %v594_v32 }
 0x112   :  { %v385_v37 = vadd.f32 %v2516_v38, %v384_v36  ;;  %1999 = vmatpush3.msra.mxu1 %v578_v34 }
 0x113   :  { %v386_v39 = vpop.f32.mrf.mxu0 }
 0x114   :  { %v467_v40 = vmax.f32 %v385_v37, 0.0 }
 0x115   :  { %v2576_v42 = vpop.f32.mrf.mxu0 }
 0x116   :  { %696 = vmatprep.mubr.f32.mxu1 %v467_v40 }
 0x117   :  { %v391_v44 = vpop.f32.mrf.mxu0  ;;  %697 = vmatmul.mubr.f32.gmra.mxu1 %v466_v41 }
 0x119   :  { %v394_v45 = vpop.f32.mrf.mxu0 }
 0x11a   :  { %v395_v47 = vadd.f32 %v2516_v38, %v394_v45 }
 0x11b   :  { %v396_v46 = vpop.f32.mrf.mxu0 }
 0x11c   :  { %v469_v52 = vmax.f32 %v395_v47, 0.0 }
 0x11d   :  { %v399_v48 = vpop.f32.mrf.mxu0 }
 0x11e   :  { %v400_v49 = vadd.f32 %v2516_v38, %v399_v48 }
 0x11f   :  { %v401_v50 = vpop.f32.mrf.mxu0 }
 0x120   :  { %v470_v51 = vmax.f32 %v400_v49, 0.0 }
 0x121   :  { %v404_v53 = vpop.f32.mrf.mxu0 }
 0x122   :  { %701 = vmatprep.mubr.f32.mxu1 %v470_v51  ;;  %v405_v34 = vadd.f32 %v2516_v38, %v404_v53 }
 0x123   :  { %v406_v54 = vpop.f32.mrf.mxu0  ;;  %702 = vmatmul.mubr.f32.gmra.mxu1 %v469_v52 }
 0x124   :  { %v471_v14 = vmax.f32 %v405_v34, 0.0  ;;  %v881_v34 = vld [vmem:[%s2629_s25 + $0x40] sm:$0xff] }
 0x125   :  { %v409_v56 = vpop.f32.mrf.mxu0 }
 0x126   :  { %v410_v58 = vadd.f32 %v2516_v38, %v409_v56 }
 0x127   :  { %v411_v57 = vpop.f32.mrf.mxu0 }
 0x128   :  { %v472_v63 = vmax.f32 %v410_v58, 0.0 }
 0x129   :  { %v414_v59 = vpop.f32.mrf.mxu0 }
 0x12a   :  { %v415_v60 = vadd.f32 %v2516_v38, %v414_v59 }
 0x12b   :  { %v416_v61 = vpop.f32.mrf.mxu0 }
 0x12c   :  { %v473_v62 = vmax.f32 %v415_v60, 0.0  ;;  %v904_v61 = vld [vmem:[%s2629_s25 + $0xf8] sm:$0xff] }
 0x12d   :  { %v419_v3 = vpop.f32.mrf.mxu0  ;;  %2024 = vmatprep.subr.mxu1 %v904_v61 }
 0x12e   :  { %706 = vmatprep.mubr.f32.mxu1 %v473_v62  ;;  %v888_v62 = vld [vmem:[%s2629_s25 + $0x78] sm:$0xff] }
 0x12f   :  { %v421_v4 = vpop.f32.mrf.mxu0  ;;  %707 = vmatmul.mubr.f32.gmra.mxu1 %v472_v63 }
 0x130   :  { %v2639_v4 = vld [vmem:[%s1837_s21] ss:$0 sm:$0xff]  ;;  %s2338_s21 = smov 16  }
 0x131   :  { %v424_v5 = vpop.f32.mrf.mxu0  ;;  %s1846_s24 = sld [smem:[%s2888_s0 + %s2338_s21]]  }
 0x132   :  { %v425_v7 = vadd.f32 %v2516_v38, %v424_v5 }
 0x133   :  { %v426_v6 = vpop.f32.mrf.mxu0 }
 0x134   :  { %v475_v12 = vmax.f32 %v425_v7, 0.0 }
 0x135   :  { %v429_v8 = vpop.f32.mrf.mxu0 }
 0x136   :  { %v430_v9 = vadd.f32 %v2516_v38, %v429_v8 }
 0x137   :  { %v431_v10 = vpop.f32.mrf.mxu0 }
 0x138   :  { %v476_v11 = vmax.f32 %v430_v9, 0.0  ;;  %v902_v10 = vld [vmem:[%s2629_s25 + $0xe8] sm:$0xff] }
 0x139   :  { %v434_v13 = vpop.f32.mrf.mxu0 }
 0x13a   :  { %711 = vmatprep.mubr.f32.mxu1 %v476_v11  ;;  %v435_v36 = vadd.f32 %v2516_v38, %v434_v13  ;;  %v886_v11 = vld [vmem:[%s2629_s25 + $0x68] sm:$0xff] }
 0x13b   :  { %v436_v15 = vpop.f32.mrf.mxu0  ;;  %712 = vmatmul.mubr.f32.gmra.mxu1 %v475_v12 }
 0x13c   :  { %v477_v39 = vmax.f32 %v435_v36, 0.0  ;;  %v885_v15 = vld [vmem:[%s2629_s25 + $0x60] sm:$0xff]  ;;  %v896_v36 = vld [vmem:[%s2629_s25 + $0xb8] sm:$0xff] }
 0x13d   :  { %v439_v16 = vpop.f32.mrf.mxu0 }
 0x13e   :  { %v440_v18 = vadd.f32 %v2516_v38, %v439_v16 }
 0x13f   :  { %v441_v17 = vpop.f32.mrf.mxu0 }
 0x140   :  { %v478_v26 = vmax.f32 %v440_v18, 0.0  ;;  %v900_v17 = vld [vmem:[%s2629_s25 + $0xd8] sm:$0xff] }
 0x141   :  { %v444_v19 = vpop.f32.mrf.mxu0 }
 0x142   :  { %v445_v20 = vadd.f32 %v2516_v38, %v444_v19 }
 0x143   :  { %v446_v21 = vpop.f32.mrf.mxu0 }
 0x144   :  { %v479_v22 = vmax.f32 %v445_v20, 0.0 }
 0x145   :  { %v449_v27 = vpop.f32.mrf.mxu0 }
 0x146   :  { %716 = vmatprep.mubr.f32.mxu1 %v479_v22  ;;  %v450_v40 = vadd.f32 %v2516_v38, %v449_v27  ;;  %v884_v22 = vld [vmem:[%s2629_s25 + $0x58] sm:$0xff] }
 0x147   :  { %717 = vmatmul.mubr.f32.gmra.mxu1 %v478_v26  ;;  %v451_v28 = vpop.f32.mrf.mxu0 }
 0x148   :  { %786 = vmatprep.mubr.f32.mxu1 %v460_v1  ;;  %v390_v1 = vadd.f32 %v2516_v38, %v2576_v42  ;;  %v883_v28 = vld [vmem:[%s2629_s25 + $0x50] sm:$0xff] }
 0x149   :  { %v454_v31 = vpop.f32.mrf.mxu0 }
 0x14a   :  { %v468_v2 = vmax.f32 %v390_v1, 0.0  ;;  %v455_v24 = vadd.f32 %v2516_v38, %v454_v31  ;;  %v897_v1 = vld [vmem:[%s2629_s25 + $0xc0] sm:$0xff] }
 0x14b   :  { %787 = vmatmul.mubr.f32.vlgmr.msra.gmra.mxu1 %v459_v29  ;;  %v456_v32 = vpop.f32.mrf.mxu0 }
 0x14c   :  { %791 = vmatprep.mubr.f32.mxu1 %v463_v23  ;;  %v420_v23 = vadd.f32 %v2516_v38, %v419_v3  ;;  %v481_v37 = vmax.f32 %v455_v24, 0.0  ;;  %v887_v3 = vld [vmem:[%s2629_s25 + $0x70] sm:$0xff]  ;;  %2025 = vmatpush3.msra.mxu1 %v888_v62 }
 0x14e   :  { %v474_v35 = vmax.f32 %v420_v23, 0.0 }
 0x14f   :  { %792 = vmatmul.mubr.f32.gmra.mxu1 %v462_v33 }
 0x150   :  { %796 = vmatprep.mubr.f32.mxu1 %v466_v41  ;;  %v480_v41 = vmax.f32 %v450_v40, 0.0  ;;  %v879_v40 = vld [vmem:[%s2629_s25 + $0x30] sm:$0xff] }
 0x153   :  { %797 = vmatmul.mubr.f32.gmra.mxu1 %v465_v55 }
 0x154   :  { %801 = vmatprep.mubr.f32.mxu1 %v469_v52 }
 0x157   :  { %802 = vmatmul.mubr.f32.gmra.mxu1 %v468_v2 }
 0x158   :  { %806 = vmatprep.mubr.f32.mxu1 %v472_v63  ;;  %v903_v63 = vld [vmem:[%s2629_s25 + $0xf0] sm:$0xff] }
 0x159   :  { %2026 = vmatprep.subr.mxu1 %v903_v63 }
 0x15a   :  { %2027 = vmatpush3.msra.mxu1 %v887_v3  ;;  %v892_v3 = vld [vmem:[%s2629_s25 + $0x98] sm:$0xff] }
 0x15b   :  { %807 = vmatmul.mubr.f32.gmra.mxu1 %v471_v14  ;;  %2028 = vmatprep.subr.mxu1 %v902_v10  ;;  %v890_v10 = vld [vmem:[%s2629_s25 + $0x88] sm:$0xff] }
 0x15c   :  { %811 = vmatprep.mubr.f32.mxu1 %v475_v12  ;;  %v901_v12 = vld [vmem:[%s2629_s25 + $0xe0] sm:$0xff]  ;;  %2029 = vmatpush3.msra.mxu1 %v886_v11 }
 0x15d   :  { %2030 = vmatprep.subr.mxu1 %v901_v12 }
 0x15e   :  { %2031 = vmatpush3.msra.mxu1 %v885_v15 }
 0x15f   :  { %812 = vmatmul.mubr.f32.gmra.mxu1 %v474_v35  ;;  %2032 = vmatprep.subr.mxu1 %v900_v17 }
 0x160   :  { %816 = vmatprep.mubr.f32.mxu1 %v478_v26  ;;  %v899_v26 = vld [vmem:[%s2629_s25 + $0xd0] sm:$0xff]  ;;  %2033 = vmatpush3.msra.mxu1 %v884_v22 }
 0x161   :  { %2034 = vmatprep.subr.mxu1 %v899_v26 }
 0x162   :  { %2035 = vmatpush3.msra.mxu1 %v883_v28 }
 0x163   :  { %817 = vmatmul.mubr.f32.gmra.mxu1 %v477_v39  ;;  %2036 = vmatprep.subr.mxu1 %v898_v30  ;;  %v895_v39 = vld [vmem:[%s2629_s25 + $0xb0] sm:$0xff] }
 0x164   :  { %821 = vmatprep.mubr.f32.mxu1 %v481_v37  ;;  %2037 = vmatpush3.msra.mxu1 %v882_v43  ;;  %v880_v37 = vld [vmem:[%s2629_s25 + $0x38] sm:$0xff] }
 0x165   :  { %2038 = vmatprep.subr.mxu1 %v897_v1  ;;  %v988_v1 = vld [vmem:[%s1840_s2 + $0x28] sm:$0xff] }
 0x166   :  { %2039 = vmatpush3.msra.mxu1 %v881_v34  ;;  %v986_v34 = vld [vmem:[%s1840_s2 + $0x18] sm:$0xff] }
 0x167   :  { %822 = vmatmul.mubr.f32.gmra.mxu1 %v480_v41  ;;  %2040 = vmatprep.subr.mxu1 %v896_v36  ;;  %v1887_v36 = vld [vmem:[%s1839_s6] ss:$0 sm:$0xff]  ;;  %s2814_s6 = sld [smem:[%s2888_s0 + %s2341_s3]]  }
 0x168   :  { %2041 = vmatpush3.msra.mxu1 %v880_v37 }
 0x169   :  { %2042 = vmatprep.subr.mxu1 %v895_v39 }
 0x16a   :  { %2043 = vmatpush3.msra.mxu1 %v879_v40 }
 0x1b3   :  { %v1944_v42 = vpop.f32.mrf.mxu1 }
 0x1b5   :  { %v1945_v44 = vpop.f32.mrf.mxu1 }
 0x1b6   :  { %v1946_v59 = vadd.f32 %v1945_v44, %v1944_v42 }
 0x1b8   :  { %v684_v6 = vadd.f32 %v1946_v59, %v2639_v4  ;;  %v877_v59 = vld [vmem:[%s2629_s25 + $0x20] sm:$0xff] }
 0x1bf   :  { %v1947_v45 = vpop.f32.mrf.mxu1 }
 0x1c1   :  { %v1948_v46 = vpop.f32.mrf.mxu1 }
 0x1c2   :  { %v1949_v7 = vadd.f32 %v1948_v46, %v1947_v45 }
 0x1c4   :  { %v689_v18 = vadd.f32 %v1949_v7, %v2639_v4 }
 0x1cb   :  { %v1950_v47 = vpop.f32.mrf.mxu1 }
 0x1cd   :  { %v1951_v48 = vpop.f32.mrf.mxu1 }
 0x1ce   :  { %v1952_v19 = vadd.f32 %v1951_v48, %v1950_v47  ;;  %v894_v47 = vld [vmem:[%s2629_s25 + $0xa8] sm:$0xff] }
 0x1cf   :  { %v878_v48 = vld [vmem:[%s2629_s25 + $0x28] sm:$0xff]  ;;  %2044 = vmatprep.subr.mxu1 %v894_v47  ;;  %v1079_v47 = vld [vmem:[%s2714_s10 + $0x18] sm:$0xff] }
 0x1d0   :  { %v694_v31 = vadd.f32 %v1952_v19, %v2639_v4  ;;  %2045 = vmatpush3.msra.mxu1 %v878_v48  ;;  %v873_v19 = vld [vmem:[%s2629_s25] sm:$0xff]  ;;  %v1078_v48 = vld [vmem:[%s2714_s10 + $0x10] sm:$0xff] }
 0x1d7   :  { %v2607_v49 = vpop.f32.mrf.mxu1 }
 0x1d9   :  { %v2609_v50 = vpop.f32.mrf.mxu1 }
 0x1da   :  { %v1955_v7 = vadd.f32 %v2609_v50, %v2607_v49  ;;  %v874_v49 = vld [vmem:[%s2629_s25 + $0x8] sm:$0xff] }
 0x1dc   :  { %v699_v17 = vadd.f32 %v1955_v7, %v2639_v4 }
 0x1e3   :  { %v2611_v51 = vpop.f32.mrf.mxu1 }
 0x1e5   :  { %v2613_v52 = vpop.f32.mrf.mxu1 }
 0x1e6   :  { %v1958_v23 = vadd.f32 %v2613_v52, %v2611_v51  ;;  %v893_v51 = vld [vmem:[%s2629_s25 + $0xa0] sm:$0xff] }
 0x1e7   :  { %2046 = vmatprep.subr.mxu1 %v893_v51  ;;  %v1077_v51 = vld [vmem:[%s2714_s10 + $0x8] sm:$0xff] }
 0x1e8   :  { %v704_v42 = vadd.f32 %v1958_v23, %v2639_v4  ;;  %2047 = vmatpush3.msra.mxu1 %v877_v59  ;;  %v984_v23 = vld [vmem:[%s1840_s2 + $0x8] sm:$0xff]  ;;  %v1075_v59 = vld [vmem:[%s1831_s14] sm:$0xff]  ;;  %s2856_s14 = sld [smem:[%s2888_s0 + %s2343_s11]]  }
 0x1e9   :  { %2048 = vmatprep.subr.mxu1 %v892_v3 }
 0x1ef   :  { %v2615_v53 = vpop.f32.mrf.mxu1 }
 0x1f1   :  { %v2617_v38 = vpop.f32.mrf.mxu1 }
 0x1f2   :  { %v1961_v44 = vadd.f32 %v2617_v38, %v2615_v53 }
 0x1f4   :  { %v709_v53 = vadd.f32 %v1961_v44, %v2639_v4  ;;  %v1082_v44 = vld [vmem:[%s2714_s10 + $0x30] sm:$0xff] }
 0x1fb   :  { %v2619_v54 = vpop.f32.mrf.mxu1 }
 0x1fd   :  { %v2624_v56 = vpop.f32.mrf.mxu1 }
 0x207   :  { %v2631_v57 = vpop.f32.mrf.mxu1 }
 0x209   :  { %v2633_v58 = vpop.f32.mrf.mxu1 }
 0x20a   :  { %v1967_v11 = vadd.f32 %v2633_v58, %v2631_v57 }
 0x20b   :  { %v2000_v60 = vpop.f32.mrf.mxu1 }
 0x20d   :  { %v2001_v5 = vpop.f32.mrf.mxu1 }
 0x20e   :  { %v2002_v8 = vadd.f32 %v2001_v5, %v2000_v60  ;;  %v1964_v60 = vadd.f32 %v2624_v56, %v2619_v54  ;;  %v876_v5 = vld [vmem:[%s2629_s25 + $0x18] sm:$0xff]  ;;  %v875_v54 = vld [vmem:[%s2629_s25 + $0x10] sm:$0xff] }
 0x20f   :  { %v2003_v9 = vpop.f32.mrf.mxu1  ;;  %2049 = vmatpush3.msra.mxu1 %v876_v5 }
 0x210   :  { %v789_v13 = vadd.f32 %v2002_v8, %v684_v6  ;;  %v891_v6 = vld [vmem:[%s2629_s25 + $0x90] sm:$0xff]  ;;  %v714_v56 = vadd.f32 %v1964_v60, %v2639_v4 }
 0x211   :  { %v2004_v16 = vpop.f32.mrf.mxu1  ;;  %2050 = vmatprep.subr.mxu1 %v891_v6  ;;  %v1181_v60 = vld [vmem:[%s1845_s18 + $0x10] sm:$0xff] }
 0x212   :  { %v827_v20 = vmax.f32 %v789_v13, 0.0  ;;  %v2005_v21 = vadd.f32 %v2004_v16, %v2003_v9  ;;  %2051 = vmatpush3.msra.mxu1 %v875_v54  ;;  %v889_v16 = vld [vmem:[%s2629_s25 + $0x80] sm:$0xff]  ;;  %s2339_s25 = smov 22  }
 0x213   :  { %v2006_v25 = vpop.f32.mrf.mxu1  ;;  %2052 = vmatprep.subr.mxu1 %v890_v10  ;;  %v1175_v10 = vld [vmem:[%s1844_s4] sm:$0xff] }
 0x214   :  { %v794_v27 = vadd.f32 %v2005_v21, %v689_v18  ;;  %836 = vst.msk [vmem:[#allocation3] sm:$0xff] %vm835_vm2, %v827_v20  ;;  %2053 = vmatpush3.msra.mxu1 %v874_v49  ;;  %v719_v21 = vadd.f32 %v1967_v11, %v2639_v4  ;;  %v1891_v11 = vld [vmem:[%s1843_s8] ss:$0 sm:$0xff] }
 0x215   :  { %v2007_v29 = vpop.f32.mrf.mxu1  ;;  %2054 = vmatprep.subr.mxu1 %v889_v16 }
 0x216   :  { %v2008_v32 = vadd.f32 %v2007_v29, %v2006_v25  ;;  %v828_v33 = vmax.f32 %v794_v27, 0.0  ;;  %2055 = vmatpush3.msra.mxu1 %v873_v19 }
 0x217   :  { %v2009_v55 = vpop.f32.mrf.mxu1  ;;  %2126 = vmatprep.subr.mxu1 %v2314_v0 }
 0x218   :  { %838 = vrot.lane.b32.xlu0 %v828_v33, %s2320_s26  ;;  %v799_v2 = vadd.f32 %v2008_v32, %v694_v31 }
 0x219   :  { %v2010_v14 = vpop.f32.mrf.mxu1 }
 0x21a   :  { %v829_v24 = vmax.f32 %v799_v2, 0.0  ;;  %v2011_v12 = vadd.f32 %v2010_v14, %v2009_v55  ;;  %v989_v55 = vld [vmem:[%s1840_s2 + $0x30] sm:$0x1]  ;;  %v987_v2 = vld [vmem:[%s1840_s2 + $0x20] sm:$0xff] }
 0x21b   :  { %v2012_v35 = vpop.f32.mrf.mxu1  ;;  %v985_v14 = vld [vmem:[%s1840_s2 + $0x10] sm:$0xff] }
 0x21c   :  { %844 = vrot.lane.b32.xlu1 %v829_v24, %s2321_s27  ;;  %v804_v57 = vadd.f32 %v2011_v12, %v699_v17  ;;  %v983_v24 = vld [vmem:[%s1840_s2] sm:$0xff]  ;;  %s1833_s2 = sld [smem:[%s2888_s0 + %s2340_s29]]  }
 0x21d   :  { %v2013_v41 = vpop.f32.mrf.mxu1 }
 0x21e   :  { %v2014_v45 = vadd.f32 %v2013_v41, %v2012_v35  ;;  %v830_v26 = vmax.f32 %v804_v57, 0.0  ;;  %v1900_v57 = vld [vmem:[%s1848_s16] ss:$0 sm:$0xff] }
 0x21f   :  { %v2015_v46 = vpop.f32.mrf.mxu1 }
 0x220   :  { %v809_v52 = vadd.f32 %v2014_v45, %v704_v42  ;;  %v1083_v42 = vld [vmem:[%s2714_s10 + $0x38] sm:$0x7]  ;;  %v1081_v45 = vld [vmem:[%s2714_s10 + $0x28] sm:$0xff] }
 0x221   :  { %v2016_v61 = vpop.f32.mrf.mxu1 }
 0x222   :  { %v831_v38 = vmax.f32 %v809_v52, 0.0  ;;  %v2017_v62 = vadd.f32 %v2016_v61, %v2015_v46  ;;  %v1080_v46 = vld [vmem:[%s2714_s10 + $0x20] sm:$0xff]  ;;  %v1180_v61 = vld [vmem:[%s1845_s18 + $0x8] sm:$0xff] }
 0x223   :  { %v2018_v63 = vpop.f32.mrf.mxu1  ;;  %v1076_v52 = vld [vmem:[%s2714_s10] sm:$0xff]  ;;  %s1851_s10 = sld [smem:[%s2888_s0 + %s2342_s7]]  }
 0x224   :  { %v814_v8 = vadd.f32 %v2017_v62, %v709_v53  ;;  %855 = vst.msk [vmem:[#allocation3 + $0x8] sm:$0xff] %vm835_vm2, %v831_v38  ;;  %v1179_v53 = vld [vmem:[%s1845_s18] sm:$0xff]  ;;  %v2329_v38 = vmov 0   ;;  %s1853_s18 = sld [smem:[%s2888_s0 + %s2344_s15]]  }
 0x225   :  { %v2019_v9 = vpop.f32.mrf.mxu1  ;;  %2304 = vset.pattern.permute.xlu0 %v2329_v38  ;;  %2305 = vset.pattern.permute.xlu1 %v2329_v38  ;;  %v1343_v62 = vld [vmem:[%s1832_s22] sm:$0xff]  ;;  %s1854_s22 = sld [smem:[%s2888_s0 + %s2345_s19]]  }
 0x226   :  { %v832_v13 = vmax.f32 %v814_v8, 0.0  ;;  %v2020_v15 = vadd.f32 %v2019_v9, %v2018_v63  ;;  %v1178_v8 = vld [vmem:[%s1844_s4 + $0x18] sm:$0xff]  ;;  %v1176_v9 = vld [vmem:[%s1844_s4 + $0x8] sm:$0xff]  ;;  %v1649_v38 = vld [vmem:[%s2814_s6 + $0x40] sm:$0xff] }
 0x227   :  { %v2021_v50 = vpop.f32.mrf.mxu1 }
 0x228   :  { %v819_v18 = vadd.f32 %v2020_v15, %v714_v56  ;;  %857 = vrot.lane.b32.xlu0 %v832_v13, %s2320_s26  ;;  %s2751_s26 = sld [smem:[%s2888_s0 + %s2331_s23]]   ;;  %v1177_v56 = vld [vmem:[%s1844_s4 + $0x10] sm:$0xff]  ;;  %s2346_s23 = smov 26  }
 0x229   :  { %v2022_v20 = vpop.f32.mrf.mxu1  ;;  %s1859_s4 = sld [smem:[%s2888_s0 + %s2348_s1]]  }
 0x22a   :  { %v833_v58 = vmax.f32 %v819_v18, 0.0  ;;  %v2023_v22 = vadd.f32 %v2022_v20, %v2021_v50 }
 0x22c   :  { %v824_v25 = vadd.f32 %v2023_v22, %v719_v21  ;;  %862 = vrot.lane.b32.xlu1 %v833_v58, %s2321_s27  ;;  %s2332_s27 = smov 11   ;;  %v1899_v21 = vld [vmem:[%s1847_s12] ss:$0 sm:$0xff]  ;;  %v1378_v22 = vld [vmem:[%s1850_s20 + $0x18] sm:$0xff] }
 0x22d   :  { %s1841_s30 = sld [smem:[%s2888_s0 + %s2332_s27]]   ;;  %s2347_s27 = smov 28  }
 0x22e   :  { %v834_v27 = vmax.f32 %v824_v25, 0.0  ;;  %v1374_v63 = vld [vmem:[%s2751_s26 + $0x18] sm:$0xff]  ;;  %v1373_v3 = vld [vmem:[%s2751_s26 + $0x10] sm:$0xff]  ;;  %v1372_v19 = vld [vmem:[%s2751_s26 + $0x8] sm:$0xff] }
 0x22f   :  { %2194 = vmatpush3.msra.mxu0 %v1374_v63  ;;  %v1377_v25 = vld [vmem:[%s1850_s20 + $0x10] sm:$0xff] }
 0x230   :  { %850 = vrot.lane.b32.xlu1 %v830_v26, %s2322_s28  ;;  %867 = vrot.lane.b32.xlu0 %v834_v27, %s2322_s28  ;;  %s1852_s28 = sld [smem:[%s2888_s0 + %s2339_s25]]   ;;  %v1647_v63 = vld [vmem:[%s2814_s6 + $0x30] sm:$0xff] }
 0x231   :  { %2195 = vmatprep.subr.mxu0 %v2314_v0 }
 0x232   :  { %2196 = vmatpush3.msra.mxu0 %v1373_v3  ;;  %v1646_v3 = vld [vmem:[%s2814_s6 + $0x28] sm:$0xff] }
 0x233   :  { %2197 = vmatprep.subr.mxu0 %v2314_v0  ;;  %v1888_v5 = vld [vmem:[%s1841_s30] ss:$0 sm:$0xff]  ;;  %s1858_s30 = sld [smem:[%s2888_s0 + %s2347_s27]]  }
 0x234   :  { %1347 = vperm.xlu0 %2304, %v1343_v62   ;;  %2198 = vmatpush3.msra.mxu0 %v1372_v19  ;;  %v1648_v62 = vld [vmem:[%s2814_s6 + $0x38] sm:$0xff]  ;;  %v1742_v19 = vld [vmem:[%s2856_s14 + $0x28] sm:$0xff] }
 0x235   :  { %2199 = vmatprep.subr.mxu0 %v2314_v0 }
 0x28a   :  { %v839_v28 = vpop.permute.xlu0 %838 }
 0x28b   :  { %842 = vst.msk [vmem:[#allocation3] sm:$0xff] %vm841_vm3, %v839_v28 }
 0x28e   :  { %v845_v4 = vpop.permute.xlu1 %844 }
 0x28f   :  { %848 = vst.msk [vmem:[#allocation3] sm:$0xff] %vm847_vm4, %v845_v4 }
 0x29a   :  { %v858_v29 = vpop.permute.xlu0 %857 }
 0x29b   :  { %860 = vst.msk [vmem:[#allocation3 + $0x8] sm:$0xff] %vm841_vm3, %v858_v29  ;;  %v1376_v29 = vld [vmem:[%s1850_s20 + $0x8] sm:$0xff] }
 0x29e   :  { %v863_v30 = vpop.permute.xlu1 %862 }
 0x29f   :  { %865 = vst.msk [vmem:[#allocation3 + $0x8] sm:$0xff] %vm847_vm4, %v863_v30 }
 0x2a2   :  { %v851_v31 = vpop.permute.xlu1 %850  ;;  %v868_v32 = vpop.permute.xlu0 %867 }
 0x2a3   :  { %854 = vst.msk [vmem:[#allocation3] sm:$0xff] %vm853_vm5, %v851_v31  ;;  %870 = vst.msk [vmem:[#allocation3 + $0x8] sm:$0xff] %vm853_vm5, %v868_v32  ;;  %v1375_v31 = vld [vmem:[%s1850_s20] sm:$0xff] }
 0x2aa   :  { %v872_v33 = vld [vmem:[#allocation3 + $0x8] sm:$0xff]  ;;  %v871_v43 = vld [vmem:[#allocation3] sm:$0xff] }
 0x2ab   :  { %976 = vmatprep.mubr.f32.mxu1 %v872_v33  ;;  %v1371_v33 = vld [vmem:[%s2751_s26] sm:$0xff]  ;;  %s1856_s26 = sld [smem:[%s2888_s0 + %s2346_s23]]  }
 0x2ac   :  { %977 = vmatmul.mubr.f32.vlgmr.msra.gmra.mxu1 %v871_v43  ;;  %2200 = vmatpush3.msra.mxu0 %v1371_v33  ;;  %v1737_v33 = vld [vmem:[%s2856_s14] sm:$0xff] }
 0x2ad   :  { %2127 = vmatpush3.msk.msra.mxu1 %vm1001_vm6, %v989_v55  ;;  %2140 = vmatprep.mubr.msk.f32.mxu1 %vm2324_vm7, %v2314_v0 }
 0x2ae   :  { %2128 = vmatprep.subr.mxu1 %v2314_v0  ;;  %2215 = vmatprep.subr.mxu0 %v2314_v0 }
 0x2af   :  { %2129 = vmatpush3.msra.mxu1 %v988_v1  ;;  %v1348_v20 = vpop.permute.xlu0 %1347 }
 0x2b0   :  { %2130 = vmatprep.subr.mxu1 %v2314_v0  ;;  %v1356_v58 = vmul.f32 %v1899_v21, %v1348_v20  ;;  %v1741_v20 = vld [vmem:[%s2856_s14 + $0x20] sm:$0xff]  ;;  %v1740_v21 = vld [vmem:[%s2856_s14 + $0x18] sm:$0xff] }
 0x2b1   :  { %2131 = vmatpush3.msra.mxu1 %v987_v2  ;;  %v1897_v2 = vld [vmem:[%s1846_s24] ss:$0 sm:$0xff] }
 0x2b2   :  { %2132 = vmatprep.subr.mxu1 %v2314_v0  ;;  %v1364_v26 = vadd.f32 %v1900_v57, %v1356_v58  ;;  %v1906_v57 = vld [vmem:[%s1853_s18] ss:$0 sm:$0xff] }
 0x2b3   :  { %2133 = vmatpush3.msra.mxu1 %v986_v34 }
 0x2b4   :  { %2134 = vmatprep.subr.mxu1 %v2314_v0  ;;  %v1366_v27 = vmin.f32 %v1364_v26, 0.0  ;;  %vm1365_vm13 = vcmp.gt.f32.partialorder %v1364_v26, 0.0 }
 0x2b5   :  { %2135 = vmatpush3.msra.mxu1 %v985_v14 }
 0x2b6   :  { %2136 = vmatprep.subr.mxu1 %v2314_v0  ;;  %v1367_v28 = vmul.f32 1.442695, %v1366_v27 }
 0x2b7   :  { %2137 = vmatpush3.msra.mxu1 %v984_v23 }
 0x2b8   :  { %2138 = vmatprep.subr.mxu1 %v2314_v0 }
 0x2b9   :  { %2139 = vmatpush3.msra.mxu1 %v983_v24 }
 0x2ba   :  { %2143 = vmatprep.subr.mxu1 %v2314_v0 }
 0x36c   :  { %v2056_v35 = vpop.f32.mrf.mxu1 }
 0x36e   :  { %v2057_v37 = vpop.f32.mrf.mxu1 }
 0x36f   :  { %v2058_v39 = vadd.f32 %v2057_v37, %v2056_v35 }
 0x371   :  { %v979_v40 = vadd.f32 %v2058_v39, %v1887_v36 }
 0x373   :  { %v982_v41 = vmax.f32 %v979_v40, 0.0 }
 0x375   :  { %2141 = vmatmul.mubr.msk.f32.vlgmr.msra.gmra.mxu1 %vm997_vm8, %v982_v41 }
 0x376   :  { %2144 = vmatpush3.msk.msra.mxu1 %vm1095_vm9, %v1083_v42  ;;  %2159 = vmatprep.mubr.msk.f32.mxu1 %vm2324_vm7, %v2314_v0  ;;  %v1542_v42 = vld [vmem:[%s1852_s28 + $0x18] sm:$0xff] }
 0x377   :  { %2145 = vmatprep.subr.mxu1 %v2314_v0 }
 0x378   :  { %2146 = vmatpush3.msra.mxu1 %v1082_v44  ;;  %v1541_v44 = vld [vmem:[%s1852_s28 + $0x10] sm:$0xff] }
 0x379   :  { %2147 = vmatprep.subr.mxu1 %v2314_v0 }
 0x37a   :  { %2148 = vmatpush3.msra.mxu1 %v1081_v45  ;;  %v1540_v45 = vld [vmem:[%s1852_s28 + $0x8] sm:$0xff] }
 0x37b   :  { %2149 = vmatprep.subr.mxu1 %v2314_v0 }
 0x37c   :  { %2150 = vmatpush3.msra.mxu1 %v1080_v46  ;;  %v1539_v46 = vld [vmem:[%s1852_s28] sm:$0xff] }
 0x37d   :  { %2151 = vmatprep.subr.mxu1 %v2314_v0 }
 0x37e   :  { %2152 = vmatpush3.msra.mxu1 %v1079_v47  ;;  %v1543_v47 = vld [vmem:[%s1833_s2] sm:$0xff] }
 0x37f   :  { %2153 = vmatprep.subr.mxu1 %v2314_v0  ;;  %1547 = vperm.xlu1 %2305, %v1543_v47  }
 0x380   :  { %2154 = vmatpush3.msra.mxu1 %v1078_v48  ;;  %v1656_v48 = vld [vmem:[%s2814_s6 + $0x78] sm:$0xff] }
 0x381   :  { %2155 = vmatprep.subr.mxu1 %v2314_v0 }
 0x382   :  { %2156 = vmatpush3.msra.mxu1 %v1077_v51  ;;  %v1655_v51 = vld [vmem:[%s2814_s6 + $0x70] sm:$0xff] }
 0x383   :  { %2157 = vmatprep.subr.mxu1 %v2314_v0 }
 0x384   :  { %2158 = vmatpush3.msra.mxu1 %v1076_v52  ;;  %v1654_v52 = vld [vmem:[%s2814_s6 + $0x68] sm:$0xff] }
 0x385   :  { %2160 = vmatmul.mubr.msk.f32.vlgmr.msra.gmra.mxu1 %vm1091_vm10, %v1075_v59  ;;  %2162 = vmatprep.subr.mxu1 %v2314_v0  ;;  %v1653_v59 = vld [vmem:[%s2814_s6 + $0x60] sm:$0xff] }
 0x386   :  { %2163 = vmatpush3.msra.mxu1 %v1181_v60  ;;  %2168 = vmatprep.mubr.msk.f32.mxu1 %vm2324_vm7, %v2314_v0  ;;  %v1652_v60 = vld [vmem:[%s2814_s6 + $0x58] sm:$0xff] }
 0x387   :  { %2164 = vmatprep.subr.mxu1 %v2314_v0 }
 0x388   :  { %2165 = vmatpush3.msra.mxu1 %v1180_v61  ;;  %v1651_v61 = vld [vmem:[%s2814_s6 + $0x50] sm:$0xff] }
 0x389   :  { %2166 = vmatprep.subr.mxu1 %v2314_v0 }
 0x38a   :  { %2167 = vmatpush3.msra.mxu1 %v1179_v53  ;;  %v1650_v53 = vld [vmem:[%s2814_s6 + $0x48] sm:$0xff] }
 0x38b   :  { %2171 = vmatprep.subr.mxu1 %v2314_v0 }
 0x3fa   :  { %v1548_v58 = vpop.permute.xlu1 %1547 }
 0x435   :  { %v1071_v6 = vpop.f32.mrf.mxu1 }
 0x436   :  { %v1072_v7 = vadd.f32 %v1888_v5, %v1071_v6  ;;  %v1645_v5 = vld [vmem:[%s2814_s6 + $0x20] sm:$0xff] }
 0x437   :  { %v2142_v54 = vpop.f32.mrf.mxu1 }
 0x438   :  { %2169 = vmatmul.mubr.msk.f32.vlgmr.msra.gmra.mxu1 %vm1182_vm11, %v1072_v7  ;;  %v1904_v7 = vld [vmem:[%s1851_s10] ss:$0 sm:$0xff] }
 0x439   :  { %2172 = vmatpush3.msra.mxu1 %v1178_v8  ;;  %2179 = vmatprep.mubr.msk.f32.mxu1 %vm2324_vm7, %v2314_v0 }
 0x43a   :  { %2173 = vmatprep.subr.mxu1 %v2314_v0 }
 0x43b   :  { %2174 = vmatpush3.msra.mxu1 %v1177_v56 }
 0x43c   :  { %2175 = vmatprep.subr.mxu1 %v2314_v0 }
 0x43d   :  { %2176 = vmatpush3.msra.mxu1 %v1176_v9 }
 0x43e   :  { %2177 = vmatprep.subr.mxu1 %v2314_v0 }
 0x43f   :  { %2178 = vmatpush3.msra.mxu1 %v1175_v10 }
 0x440   :  { %2182 = vmatprep.subr.mxu1 %v2314_v0 }
 0x445   :  { %v1165_v12 = vpop.f32.mrf.mxu1 }
 0x446   :  { %v1166_v13 = vadd.f32 %v1891_v11, %v1165_v12 }
 0x447   :  { %v2161_v15 = vpop.f32.mrf.mxu1 }
 0x448   :  { %v1170_v49 = vmin.f32 %v1166_v13, 0.0  ;;  %vm1169_vm12 = vcmp.gt.f32.partialorder %v1166_v13, 0.0  ;;  %v1644_v15 = vld [vmem:[%s2814_s6 + $0x18] sm:$0xff] }
 0x44a   :  { %v1171_v50 = vmul.f32 1.442695, %v1170_v49  ;;  %v1643_v49 = vld [vmem:[%s2814_s6 + $0x10] sm:$0xff] }
 0x44c   :  { %2306 = vpow2.f32 %v1171_v50  ;;  %v1642_v50 = vld [vmem:[%s2814_s6 + $0x8] sm:$0xff] }
 0x44d   :  { %2308 = vpow2.f32 %v1367_v28 }
 0x459   :  { %v2307_v16 = vpop.eup %2306 }
 0x45a   :  { %v1894_v17 = vadd.f32 -1.0, %v2307_v16  ;;  %v2309_v4 = vpop.eup %2308  ;;  %v1641_v16 = vld [vmem:[%s2814_s6] sm:$0xff] }
 0x45b   :  { %v1901_v30 = vadd.f32 -1.0, %v2309_v4 }
 0x45c   :  { %v1174_v18 = vsel %vm1169_vm12, %v1166_v13, %v1894_v17  ;;  %v1744_v17 = vld [vmem:[%s2856_s14 + $0x38] sm:$0xff] }
 0x45d   :  { %2180 = vmatmul.mubr.msk.f32.vlgmr.msra.gmra.mxu1 %vm835_vm2, %v1174_v18  ;;  %v1370_v32 = vsel %vm1365_vm13, %v1364_v26, %v1901_v30  ;;  %v1743_v18 = vld [vmem:[%s2856_s14 + $0x30] sm:$0xff]  ;;  %v1908_v26 = vld [vmem:[%s1854_s22] ss:$0 sm:$0xff] }
 0x45e   :  { %2190 = vmatprep.mubr.msk.f32.mxu1 %vm2324_vm7, %v2314_v0  ;;  %2183 = vmatpush3.msra.mxu1 %v1378_v22  ;;  %v1556_v22 = vmul.f32 %v1906_v57, %v1548_v58 }
 0x45f   :  { %2184 = vmatprep.subr.mxu1 %v2314_v0 }
 0x460   :  { %2185 = vmatpush3.msra.mxu1 %v1377_v25 }
 0x461   :  { %2186 = vmatprep.subr.mxu1 %v2314_v0 }
 0x462   :  { %2187 = vmatpush3.msra.mxu1 %v1376_v29 }
 0x463   :  { %2188 = vmatprep.subr.mxu1 %v2314_v0 }
 0x464   :  { %2189 = vmatpush3.msra.mxu1 %v1375_v31  ;;  %v1739_v31 = vld [vmem:[%s2856_s14 + $0x10] sm:$0xff] }
 0x465   :  { %2191 = vmatmul.mubr.msk.f32.vlgmr.msra.gmra.mxu1 %vm835_vm2, %v1370_v32  ;;  %2204 = vmatprep.subr.mxu1 %v2314_v0  ;;  %v1738_v32 = vld [vmem:[%s2856_s14 + $0x8] sm:$0xff] }
 0x466   :  { %2212 = vmatprep.mubr.msk.f32.mxu1 %vm2324_vm7, %v2314_v0  ;;  %2205 = vmatpush3.msra.mxu1 %v1542_v42 }
 0x467   :  { %2206 = vmatprep.subr.mxu1 %v2314_v0 }
 0x468   :  { %2207 = vmatpush3.msra.mxu1 %v1541_v44 }
 0x469   :  { %2208 = vmatprep.subr.mxu1 %v2314_v0 }
 0x46a   :  { %2209 = vmatpush3.msra.mxu1 %v1540_v45 }
 0x46b   :  { %2210 = vmatprep.subr.mxu1 %v2314_v0 }
 0x46c   :  { %2211 = vmatpush3.msra.mxu1 %v1539_v46 }
 0x46d   :  { %2250 = vmatprep.subr.mxu1 %v2314_v0 }
 0x4f8   :  { %v1252_v43 = vpop.f32.mrf.mxu1 }
 0x4fa   :  { %v2170_v55 = vpop.f32.mrf.mxu1 }
 0x51d   :  { %v1325_v1 = vpop.f32.mrf.mxu1 }
 0x51e   :  { %v1326_v34 = vadd.f32 %v1325_v1, %v1252_v43  ;;  %v1909_v43 = vld [vmem:[%s1856_s26] ss:$0 sm:$0xff] }
 0x51f   :  { %v2181_v14 = vpop.f32.mrf.mxu1 }
 0x520   :  { %v1336_v23 = vadd.f32 %v1897_v2, %v1326_v34 }
 0x522   :  { %v1338_v24 = vmin.f32 %v1336_v23, 0.0  ;;  %vm1337_vm14 = vcmp.gt.f32.partialorder %v1336_v23, 0.0 }
 0x524   :  { %v1339_v35 = vmul.f32 1.442695, %v1338_v24 }
 0x525   :  { %v1448_v40 = vpop.f32.mrf.mxu1 }
 0x526   :  { %2310 = vpow2.f32 %v1339_v35 }
 0x527   :  { %v2192_v41 = vpop.f32.mrf.mxu1 }
 0x533   :  { %v2311_v36 = vpop.eup %2310 }
 0x534   :  { %v1898_v37 = vadd.f32 -1.0, %v2311_v36 }
 0x536   :  { %v1342_v39 = vsel %vm1337_vm14, %v1336_v23, %v1898_v37 }
 0x537   :  { %2202 = vmatmul.mubr.msk.f32.vlgmr.msra.gmra.mxu0 %vm835_vm2, %v1342_v39 }
 0x538   :  { %2247 = vmatprep.mubr.msk.f32.mxu0 %vm2324_vm7, %v2314_v0  ;;  %2216 = vmatpush3.msra.mxu0 %v1656_v48 }
 0x539   :  { %2217 = vmatprep.subr.mxu0 %v2314_v0 }
 0x53a   :  { %2218 = vmatpush3.msra.mxu0 %v1655_v51 }
 0x53b   :  { %2219 = vmatprep.subr.mxu0 %v2314_v0 }
 0x53c   :  { %2220 = vmatpush3.msra.mxu0 %v1654_v52 }
 0x53d   :  { %2221 = vmatprep.subr.mxu0 %v2314_v0 }
 0x53e   :  { %2222 = vmatpush3.msra.mxu0 %v1653_v59 }
 0x53f   :  { %2223 = vmatprep.subr.mxu0 %v2314_v0 }
 0x540   :  { %2224 = vmatpush3.msra.mxu0 %v1652_v60 }
 0x541   :  { %2225 = vmatprep.subr.mxu0 %v2314_v0 }
 0x542   :  { %2226 = vmatpush3.msra.mxu0 %v1651_v61 }
 0x543   :  { %2227 = vmatprep.subr.mxu0 %v2314_v0 }
 0x544   :  { %2228 = vmatpush3.msra.mxu0 %v1650_v53 }
 0x545   :  { %2229 = vmatprep.subr.mxu0 %v2314_v0 }
 0x546   :  { %2230 = vmatpush3.msra.mxu0 %v1649_v38 }
 0x547   :  { %2231 = vmatprep.subr.mxu0 %v2314_v0 }
 0x548   :  { %2232 = vmatpush3.msra.mxu0 %v1648_v62 }
 0x549   :  { %2233 = vmatprep.subr.mxu0 %v2314_v0 }
 0x54a   :  { %2234 = vmatpush3.msra.mxu0 %v1647_v63 }
 0x54b   :  { %2235 = vmatprep.subr.mxu0 %v2314_v0 }
 0x54c   :  { %2236 = vmatpush3.msra.mxu0 %v1646_v3 }
 0x54d   :  { %2237 = vmatprep.subr.mxu0 %v2314_v0 }
 0x54e   :  { %2238 = vmatpush3.msra.mxu0 %v1645_v5 }
 0x54f   :  { %2239 = vmatprep.subr.mxu0 %v2314_v0 }
 0x550   :  { %2240 = vmatpush3.msra.mxu0 %v1644_v15 }
 0x551   :  { %2241 = vmatprep.subr.mxu0 %v2314_v0 }
 0x552   :  { %2242 = vmatpush3.msra.mxu0 %v1643_v49 }
 0x553   :  { %2243 = vmatprep.subr.mxu0 %v2314_v0 }
 0x554   :  { %2244 = vmatpush3.msra.mxu0 %v1642_v50 }
 0x555   :  { %2245 = vmatprep.subr.mxu0 %v2314_v0 }
 0x556   :  { %2246 = vmatpush3.msra.mxu0 %v1641_v16 }
 0x5f7   :  { %v1521_v6 = vpop.f32.mrf.mxu0 }
 0x5f8   :  { %v1522_v8 = vadd.f32 %v1521_v6, %v1448_v40 }
 0x5f9   :  { %v2203_v54 = vpop.f32.mrf.mxu0 }
 0x5fa   :  { %v1532_v56 = vadd.f32 %v1904_v7, %v1522_v8 }
 0x5fc   :  { %v1534_v9 = vmin.f32 %v1532_v56, 0.0  ;;  %vm1533_vm15 = vcmp.gt.f32.partialorder %v1532_v56, 0.0 }
 0x5fe   :  { %v1535_v10 = vmul.f32 1.442695, %v1534_v9 }
 0x600   :  { %2312 = vpow2.f32 %v1535_v10 }
 0x60d   :  { %v2313_v11 = vpop.eup %2312 }
 0x60e   :  { %v1905_v12 = vadd.f32 -1.0, %v2313_v11 }
 0x610   :  { %v1538_v13 = vsel %vm1533_vm15, %v1532_v56, %v1905_v12 }
 0x611   :  { %2213 = vmatmul.mubr.msk.f32.vlgmr.msra.gmra.mxu1 %vm835_vm2, %v1538_v13  ;;  %vm1752_vm2 = vcmask 523264  }
 0x612   :  { %2266 = vmatprep.mubr.msk.f32.mxu1 %vm2324_vm7, %v2314_v0  ;;  %2251 = vmatpush3.msra.mxu1 %v1744_v17 }
 0x613   :  { %2252 = vmatprep.subr.mxu1 %v2314_v0 }
 0x614   :  { %2253 = vmatpush3.msra.mxu1 %v1743_v18 }
 0x615   :  { %2254 = vmatprep.subr.mxu1 %v2314_v0 }
 0x616   :  { %2255 = vmatpush3.msra.mxu1 %v1742_v19 }
 0x617   :  { %2256 = vmatprep.subr.mxu1 %v2314_v0 }
 0x618   :  { %2257 = vmatpush3.msra.mxu1 %v1741_v20 }
 0x619   :  { %2258 = vmatprep.subr.mxu1 %v2314_v0 }
 0x61a   :  { %2259 = vmatpush3.msra.mxu1 %v1740_v21 }
 0x61b   :  { %2260 = vmatprep.subr.mxu1 %v2314_v0 }
 0x61c   :  { %2261 = vmatpush3.msra.mxu1 %v1739_v31 }
 0x61d   :  { %2262 = vmatprep.subr.mxu1 %v2314_v0 }
 0x61e   :  { %2263 = vmatpush3.msra.mxu1 %v1738_v32 }
 0x61f   :  { %2264 = vmatprep.subr.mxu1 %v2314_v0  ;;  %v1910_v0 = vld [vmem:[%s1858_s30] ss:$0 sm:$0xff] }
 0x620   :  { %2265 = vmatpush3.msra.mxu1 %v1737_v33 }
 0x6d1   :  { %v1626_v25 = vpop.f32.mrf.mxu1 }
 0x6d2   :  { %v1627_v27 = vadd.f32 %v1626_v25, %v1556_v22 }
 0x6d3   :  { %v2214_v28 = vpop.f32.mrf.mxu1 }
 0x6d4   :  { %v1637_v4 = vadd.f32 %v1908_v26, %v1627_v27 }
 0x6d6   :  { %v1639_v29 = vmul.f32 0.02, %v1637_v4  ;;  %vm1638_vm0 = vcmp.gt.f32.partialorder %v1637_v4, 0.0 }
 0x6d8   :  { %v1640_v30 = vsel %vm1638_vm0, %v1637_v4, %v1639_v29 }
 0x6d9   :  { %2248 = vmatmul.mubr.f32.vlgmr.msra.gmra.mxu0 %v1640_v30 }
 0x799   :  { %v1730_v55 = vpop.f32.mrf.mxu0 }
 0x79a   :  { %v1731_v1 = vadd.f32 %v1909_v43, %v1730_v55 }
 0x79b   :  { %v2249_v2 = vpop.f32.mrf.mxu0 }
 0x79c   :  { %vm1734_vm1 = vcmp.gt.f32.partialorder %v1731_v1, 0.0  ;;  %v1735_v34 = vmul.f32 0.02, %v1731_v1 }
 0x79e   :  { %v1736_v14 = vsel %vm1734_vm1, %v1731_v1, %v1735_v34 }
 0x79f   :  { %2267 = vmatmul.mubr.msk.f32.vlgmr.msra.gmra.mxu1 %vm1752_vm2, %v1736_v14 }
 0x85f   :  { %v1822_v23 = vpop.f32.mrf.mxu1 }
 0x860   :  { %v1823_v24 = vadd.f32 %v1910_v0, %v1822_v23 }
 0x861   :  { %v2268_v35 = vpop.f32.mrf.mxu1 }
 0x862   :  { %1826 = vst [vmem:[%s1859_s4] sm:$0xff] %v1823_v24 }

</bundles_post_ra>
